<compile_context>
chip_gen: v6e
topology: v6e:2x2x1
jax: 0.10.0
libtpu: 0.0.40
codegen_flags: <defaults>
</compile_context>

<pallas_src>
import math

import jax
import jax.numpy as jnp
from jax.experimental import pallas as pl
from jax.experimental.pallas import tpu as pltpu

D_MODEL = 64
NHEAD = 4
HEAD_DIM = D_MODEL // NHEAD
NUM_LAYERS = 2
DIM_FF = 256
LN_EPS = 1e-5
NEG_BIG = -1e9  # finite additive mask value (avoids exp(-inf - -inf) NaN risk)


def _ln(x, gamma, beta):
    mean = jnp.mean(x, axis=-1, keepdims=True)
    var = jnp.mean((x - mean) ** 2, axis=-1, keepdims=True)
    return (x - mean) * jax.lax.rsqrt(var + LN_EPS) * gamma + beta


def encoder_kernel(h_ref, bias_ref,
                   wqkv_ref, bqkv_ref, wo_ref, bo_ref,
                   ln1_g_ref, ln1_b_ref, ln2_g_ref, ln2_b_ref,
                   ff_w1_ref, ff_b1_ref, ff_w2_ref, ff_b2_ref,
                   fc_w_ref, fc_b_ref, o_ref):
    f32, bf16 = jnp.float32, jnp.bfloat16
    Bt, S, D = h_ref.shape
    HD = HEAD_DIM
    N = Bt * S                                   # token-flattened MXU M dimension

    h = h_ref[...].reshape(N, D)                 # f32 residual stream
    bias = bias_ref[...]                         # (S, S) additive causal mask

    for l in range(NUM_LAYERS):
        # ---- fused QKV projection: one (N,64)x(64,192) matmul ----
        hb = h.astype(bf16)                      # cast once per layer
        qkv = jnp.dot(hb, wqkv_ref[l], preferred_element_type=f32) + bqkv_ref[l]
        qkv = qkv.reshape(Bt, S, 3 * D)          # 1/sqrt(head_dim) pre-folded into Q cols

        # ---- tiny per-head attention (S x S) ----
        heads = []
        for hd in range(NHEAD):
            q = qkv[:, :, hd * HD:(hd + 1) * HD].astype(bf16)
            k = qkv[:, :, D + hd * HD:D + (hd + 1) * HD].astype(bf16)
            v = qkv[:, :, 2 * D + hd * HD:2 * D + (hd + 1) * HD].astype(bf16)
            s = jnp.einsum("bqd,bkd->bqk", q, k,
                           preferred_element_type=f32) + bias        # (Bt, S, S)
            s = s - jnp.max(s, axis=-1, keepdims=True)
            p = jnp.exp(s)
            p = p * pl.reciprocal(jnp.sum(p, axis=-1, keepdims=True), approx=True)
            heads.append(jnp.einsum("bqk,bkd->bqd", p.astype(bf16), v,
                                    preferred_element_type=f32))      # (Bt, S, HD)

        # ---- single (N,64)x(64,64) output projection ----
        attn = jnp.concatenate(heads, axis=-1).reshape(N, D).astype(bf16)
        attn = jnp.dot(attn, wo_ref[l], preferred_element_type=f32) + bo_ref[l]
        h = _ln(h + attn, ln1_g_ref[l], ln1_b_ref[l])

        # ---- feed-forward (relu) ----
        hb = h.astype(bf16)
        ff = jnp.maximum(jnp.dot(hb, ff_w1_ref[l],
                                 preferred_element_type=f32) + ff_b1_ref[l], 0.0)
        ff = jnp.dot(ff.astype(bf16), ff_w2_ref[l],
                     preferred_element_type=f32) + ff_b2_ref[l]
        h = _ln(h + ff, ln2_g_ref[l], ln2_b_ref[l])

    # ---- fused head: last token of each sequence, 64 -> 1 on the VPU/XLU ----
    last = h.reshape(Bt, S, D)[:, S - 1, :]                           # (Bt, D)
    out = jnp.sum(last * fc_w_ref[...], axis=-1, keepdims=True) + fc_b_ref[...]  # (Bt,1)
    o_ref[...] = out.reshape(1, 1, Bt)                                # lane-dense store


def _choose_batch_tile(B, S):
    # ~2048 tokens per grid step keeps the MXU M dimension full and amortizes the
    # ~0.35us per-step pipeline overhead, while staying far inside the VMEM limit.
    tokens_per_step = 2048
    bt = max(1, min(B, max(1, tokens_per_step // max(S, 1))))
    n_tiles = pl.cdiv(B, bt)
    if n_tiles == 1 and B > 1:
        n_tiles = 2            # v7x: keep >= 2 grid steps so both TensorCores get work
    bt = pl.cdiv(B, n_tiles)
    if bt > 8:
        bt = ((bt + 7) // 8) * 8
    return bt


def transformer_predictor(x, params):
    """Full forward: (B, S, input_dim) -> (B, 1)."""
    B, S, Din = x.shape
    D = D_MODEL
    f32, bf16 = jnp.float32, jnp.bfloat16

    bt = _choose_batch_tile(B, S)
    n_tiles = pl.cdiv(B, bt)
    Bp = n_tiles * bt

    # Embedding (tiny K=Din matmul) + sqrt(d_model) scale + positional encoding are done
    # here so the kernel gets a lane-dense (bt, S, 64) f32 slab (per perf review).
    h0 = jnp.einsum("bsi,id->bsd", x.astype(bf16), params["w_emb"].astype(bf16),
                    preferred_element_type=f32) + params["b_emb"]
    h0 = h0 * jnp.float32(math.sqrt(D)) + params["pe"][:S]
    if Bp != B:
        # padded rows are all-zero; layernorm stays finite via eps, outputs are sliced off
        h0 = jnp.concatenate([h0, jnp.zeros((Bp - B, S, D), f32)], axis=0)

    r = jnp.arange(S)
    bias = jnp.where(r[None, :] > r[:, None],
                     jnp.float32(NEG_BIG), jnp.float32(0.0))           # (S, S)

    # Fold 1/sqrt(head_dim) into the Q columns of the fused in-projection (matches
    # PyTorch MHA, which scales q before the score matmul).
    qk_scale = 1.0 / math.sqrt(HEAD_DIM)
    col_scale = jnp.concatenate([jnp.full((D,), qk_scale, f32),
                                 jnp.ones((2 * D,), f32)])
    wqkv = (params["in_w"] * col_scale).astype(bf16)                    # (L, D, 192)
    bqkv = (params["in_b"] * col_scale).astype(f32)                     # (L, 1, 192)

    consts = [
        bias,
        wqkv, bqkv,
        params["out_w"].astype(bf16), params["out_b"].astype(f32),
        params["ln1_g"].astype(f32), params["ln1_b"].astype(f32),
        params["ln2_g"].astype(f32), params["ln2_b"].astype(f32),
        params["ff_w1"].astype(bf16), params["ff_b1"].astype(f32),
        params["ff_w2"].astype(bf16), params["ff_b2"].astype(f32),
        params["fc_w"].reshape(1, D).astype(f32),
        params["fc_b"].reshape(1, 1).astype(f32),
    ]

    def const_spec(a):
        nd = a.ndim
        # constant block index -> fetched once, not re-DMA'd across grid steps
        return pl.BlockSpec(a.shape, lambda b, nd=nd: (0,) * nd)

    out = pl.pallas_call(
        encoder_kernel,
        out_shape=jax.ShapeDtypeStruct((n_tiles, 1, bt), f32),
        grid=(n_tiles,),
        in_specs=[pl.BlockSpec((bt, S, D), lambda b: (b, 0, 0))]
                 + [const_spec(a) for a in consts],
        out_specs=pl.BlockSpec((1, 1, bt), lambda b: (b, 0, 0)),
        compiler_params=pltpu.CompilerParams(
            dimension_semantics=("parallel",),      # batch tiles independent (v7x: 2 TCs)
            vmem_limit_bytes=32 * 1024 * 1024),     # plenty for ~2048-token tiles
    )(h0, *consts)

    return out.reshape(Bp)[:B].reshape(B, 1)


# ----------------------- parameter construction (deterministic) -----------------------

def make_positional_encoding(max_len, d_model):
    pos = jnp.arange(max_len, dtype=jnp.float32)[:, None]
    div = jnp.exp(jnp.arange(0, d_model, 2, dtype=jnp.float32)
                  * (-math.log(10000.0) / d_model))
    pe = jnp.zeros((max_len, d_model), jnp.float32)
    pe = pe.at[:, 0::2].set(jnp.sin(pos * div))
    pe = pe.at[:, 1::2].set(jnp.cos(pos * div))
    return pe


def init_params(key, input_dim):
    ks = jax.random.split(key, 12)

    def rnd(k, shape, scale=0.05):
        return (scale * jax.random.normal(k, shape)).astype(jnp.float32)

    L, D, F = NUM_LAYERS, D_MODEL, DIM_FF
    return {
        "pe": make_positional_encoding(5000, D),
        "w_emb": rnd(ks[0], (input_dim, D)),
        "b_emb": rnd(ks[1], (1, D)),
        "in_w": rnd(ks[2], (L, D, 3 * D)),      # pre-transposed vs torch in_proj_weight
        "in_b": rnd(ks[3], (L, 1, 3 * D)),
        "out_w": rnd(ks[4], (L, D, D)),
        "out_b": rnd(ks[5], (L, 1, D)),
        "ln1_g": jnp.ones((L, 1, D), jnp.float32),
        "ln1_b": jnp.zeros((L, 1, D), jnp.float32),
        "ln2_g": jnp.ones((L, 1, D), jnp.float32),
        "ln2_b": jnp.zeros((L, 1, D), jnp.float32),
        "ff_w1": rnd(ks[6], (L, D, F)),
        "ff_b1": rnd(ks[7], (L, 1, F)),
        "ff_w2": rnd(ks[8], (L, F, D)),
        "ff_b2": rnd(ks[9], (L, 1, D)),
        "fc_w": rnd(ks[10], (D, 1)),
        "fc_b": rnd(ks[11], (1,)),
    }


# --------------- pure-JAX reference (mirrors the kernel's bf16 matmul policy) ---------------

def reference_forward(x, params):
    B, S, _ = x.shape
    bf = lambda a: a.astype(jnp.bfloat16)

    def mm(a, b):
        return jnp.einsum("...ij,...jk->...ik", bf(a), bf(b),
                          preferred_element_type=jnp.float32)

    def ln(v, g, b):
        m = v.mean(-1, keepdims=True)
        var = ((v - m) ** 2).mean(-1, keepdims=True)
        return (v - m) / jnp.sqrt(var + LN_EPS) * g + b

    h = mm(x, params["w_emb"]) + params["b_emb"]
    h = h * math.sqrt(D_MODEL) + params["pe"][:S]
    r = jnp.arange(S)
    bias = jnp.where(r[None, :] > r[:, None], NEG_BIG, 0.0)
    scale = 1.0 / math.sqrt(HEAD_DIM)

    for l in range(NUM_LAYERS):
        qkv = mm(h, params["in_w"][l]) + params["in_b"][l]
        q, k, v = jnp.split(qkv, 3, axis=-1)
        qh = q.reshape(B, S, NHEAD, HEAD_DIM).transpose(0, 2, 1, 3)
        kh = k.reshape(B, S, NHEAD, HEAD_DIM).transpose(0, 2, 1, 3)
        vh = v.reshape(B, S, NHEAD, HEAD_DIM).transpose(0, 2, 1, 3)
        s = jnp.einsum("bhqd,bhkd->bhqk", bf(qh), bf(kh),
                       preferred_element_type=jnp.float32) * scale + bias
        p = jax.nn.softmax(s, axis=-1)
        o = jnp.einsum("bhqk,bhkd->bhqd", bf(p), bf(vh),
                       preferred_element_type=jnp.float32)
        o = o.transpose(0, 2, 1, 3).reshape(B, S, D_MODEL)
        o = mm(o, params["out_w"][l]) + params["out_b"][l]
        h = ln(h + o, params["ln1_g"][l], params["ln1_b"][l])
        f = jnp.maximum(mm(h, params["ff_w1"][l]) + params["ff_b1"][l], 0.0)
        f = mm(f, params["ff_w2"][l]) + params["ff_b2"][l]
        h = ln(h + f, params["ln2_g"][l], params["ln2_b"][l])
    return jnp.dot(h[:, -1, :], params["fc_w"],
                   preferred_element_type=jnp.float32) + params["fc_b"]


if __name__ == "__main__":
    INPUT_DIM = 4
    key = jax.random.PRNGKey(0)
    k_x, k_x2, k_p = jax.random.split(key, 3)
    params = init_params(k_p, INPUT_DIM)

    # small case: batch=2, seq=8 (two single-sequence tiles)
    x = jax.random.normal(k_x, (2, 8, INPUT_DIM), dtype=jnp.float32)
    out = jax.block_until_ready(transformer_predictor(x, params))
    assert out.shape == (2, 1), out.shape
    ref = jax.block_until_ready(reference_forward(x, params))
    assert jnp.allclose(out, ref, rtol=1e-2, atol=1e-2), (out, ref)

    # larger batch: exercises batch tiling (2 tiles of 5) and the parallel grid axis
    x2 = jax.random.normal(k_x2, (10, 8, INPUT_DIM), dtype=jnp.float32)
    out2 = jax.block_until_ready(transformer_predictor(x2, params))
    assert out2.shape == (10, 1), out2.shape
    ref2 = jax.block_until_ready(reference_forward(x2, params))
    assert jnp.allclose(out2, ref2, rtol=1e-2, atol=1e-2), (out2, ref2)

    print("KERNEL_OK")
</pallas_src>

<mosaic_0001>
module attributes {stable_mosaic.version = 11 : i64} {
  func.func @encoder_kernel(%arg0: i32, %arg1: memref<1x8x64xf32, #tpu.memory_space<vmem>>, %arg2: memref<8x8xf32, #tpu.memory_space<vmem>>, %arg3: memref<2x64x192xbf16, #tpu.memory_space<vmem>>, %arg4: memref<2x1x192xf32, #tpu.memory_space<vmem>>, %arg5: memref<2x64x64xbf16, #tpu.memory_space<vmem>>, %arg6: memref<2x1x64xf32, #tpu.memory_space<vmem>>, %arg7: memref<2x1x64xf32, #tpu.memory_space<vmem>>, %arg8: memref<2x1x64xf32, #tpu.memory_space<vmem>>, %arg9: memref<2x1x64xf32, #tpu.memory_space<vmem>>, %arg10: memref<2x1x64xf32, #tpu.memory_space<vmem>>, %arg11: memref<2x64x256xbf16, #tpu.memory_space<vmem>>, %arg12: memref<2x1x256xf32, #tpu.memory_space<vmem>>, %arg13: memref<2x256x64xbf16, #tpu.memory_space<vmem>>, %arg14: memref<2x1x64xf32, #tpu.memory_space<vmem>>, %arg15: memref<1x64xf32, #tpu.memory_space<vmem>>, %arg16: memref<1x1xf32, #tpu.memory_space<vmem>>, %arg17: memref<1x1x1xf32, #tpu.memory_space<vmem>>) attributes {dimension_semantics = [#tpu.dimension_semantics<parallel>], iteration_bounds = array<i64: 2>, scalar_prefetch = 0 : i64, scratch_operands = 0 : i64, tpu.core_type = #tpu.core_type<tc>, window_params = [{transform_indices = @transform_0, window_bounds = array<i64: 1, 8, 64>}, {pipeline_mode = #tpu.pipeline_mode<synchronous>, transform_indices = @transform_1, window_bounds = array<i64: 8, 8>}, {pipeline_mode = #tpu.pipeline_mode<synchronous>, transform_indices = @transform_2, window_bounds = array<i64: 2, 64, 192>}, {pipeline_mode = #tpu.pipeline_mode<synchronous>, transform_indices = @transform_3, window_bounds = array<i64: 2, 1, 192>}, {pipeline_mode = #tpu.pipeline_mode<synchronous>, transform_indices = @transform_4, window_bounds = array<i64: 2, 64, 64>}, {pipeline_mode = #tpu.pipeline_mode<synchronous>, transform_indices = @transform_5, window_bounds = array<i64: 2, 1, 64>}, {pipeline_mode = #tpu.pipeline_mode<synchronous>, transform_indices = @transform_6, window_bounds = array<i64: 2, 1, 64>}, {pipeline_mode = #tpu.pipeline_mode<synchronous>, transform_indices = @transform_7, window_bounds = array<i64: 2, 1, 64>}, {pipeline_mode = #tpu.pipeline_mode<synchronous>, transform_indices = @transform_8, window_bounds = array<i64: 2, 1, 64>}, {pipeline_mode = #tpu.pipeline_mode<synchronous>, transform_indices = @transform_9, window_bounds = array<i64: 2, 1, 64>}, {pipeline_mode = #tpu.pipeline_mode<synchronous>, transform_indices = @transform_10, window_bounds = array<i64: 2, 64, 256>}, {pipeline_mode = #tpu.pipeline_mode<synchronous>, transform_indices = @transform_11, window_bounds = array<i64: 2, 1, 256>}, {pipeline_mode = #tpu.pipeline_mode<synchronous>, transform_indices = @transform_12, window_bounds = array<i64: 2, 256, 64>}, {pipeline_mode = #tpu.pipeline_mode<synchronous>, transform_indices = @transform_13, window_bounds = array<i64: 2, 1, 64>}, {pipeline_mode = #tpu.pipeline_mode<synchronous>, transform_indices = @transform_14, window_bounds = array<i64: 1, 64>}, {pipeline_mode = #tpu.pipeline_mode<synchronous>, transform_indices = @transform_15, window_bounds = array<i64: 1, 1>}, {transform_indices = @transform_16, window_bounds = array<i64: 1, 1, 1>}]} {
    %c0 = arith.constant 0 : index
    %c0_0 = arith.constant 0 : index
    %c0_1 = arith.constant 0 : index
    %0 = vector.load %arg1[%c0, %c0_0, %c0_1] : memref<1x8x64xf32, #tpu.memory_space<vmem>>, vector<1x8x64xf32>
    %1 = vector.shape_cast %0 : vector<1x8x64xf32> to vector<8x64xf32>
    %c0_2 = arith.constant 0 : index
    %c0_3 = arith.constant 0 : index
    %2 = vector.load %arg2[%c0_2, %c0_3] : memref<8x8xf32, #tpu.memory_space<vmem>>, vector<8x8xf32>
    %3 = arith.truncf %1 : vector<8x64xf32> to vector<8x64xbf16>
    %c0_4 = arith.constant 0 : index
    %c0_5 = arith.constant 0 : index
    %c0_6 = arith.constant 0 : index
    %4 = vector.load %arg3[%c0_4, %c0_5, %c0_6] : memref<2x64x192xbf16, #tpu.memory_space<vmem>>, vector<1x64x192xbf16>
    %5 = vector.shape_cast %4 : vector<1x64x192xbf16> to vector<64x192xbf16>
    %cst = arith.constant dense<0.000000e+00> : vector<8x192xf32>
    %6 = tpu.matmul %3, %5, %cst {dimension_numbers = #tpu.dot_dimension_numbers<[1], [0], [0], [1], [0, 0, 1, 1], [], []>} : vector<8x64xbf16>, vector<64x192xbf16>, vector<8x192xf32> -> vector<8x192xf32>
    %c0_7 = arith.constant 0 : index
    %c0_8 = arith.constant 0 : index
    %c0_9 = arith.constant 0 : index
    %7 = vector.load %arg4[%c0_7, %c0_8, %c0_9] : memref<2x1x192xf32, #tpu.memory_space<vmem>>, vector<1x1x192xf32>
    %8 = vector.shape_cast %7 : vector<1x1x192xf32> to vector<1x192xf32>
    %9 = vector.broadcast %8 : vector<1x192xf32> to vector<8x192xf32>
    %10 = arith.addf %6, %9 : vector<8x192xf32>
    %11 = vector.shape_cast %10 : vector<8x192xf32> to vector<1x8x192xf32>
    %12 = vector.extract_strided_slice %11 {offsets = [0, 0, 0], sizes = [1, 8, 16], strides = [1, 1, 1]} : vector<1x8x192xf32> to vector<1x8x16xf32>
    %13 = arith.truncf %12 : vector<1x8x16xf32> to vector<1x8x16xbf16>
    %14 = vector.extract_strided_slice %11 {offsets = [0, 0, 64], sizes = [1, 8, 16], strides = [1, 1, 1]} : vector<1x8x192xf32> to vector<1x8x16xf32>
    %15 = arith.truncf %14 : vector<1x8x16xf32> to vector<1x8x16xbf16>
    %16 = vector.extract_strided_slice %11 {offsets = [0, 0, 128], sizes = [1, 8, 16], strides = [1, 1, 1]} : vector<1x8x192xf32> to vector<1x8x16xf32>
    %17 = arith.truncf %16 : vector<1x8x16xf32> to vector<1x8x16xbf16>
    "tpu.trace_start"() <{level = 10 : i32, message = "bqd,bkd->bqk"}> : () -> ()
    %cst_10 = arith.constant dense<0.000000e+00> : vector<1x8x8xf32>
    %18 = tpu.matmul %13, %15, %cst_10 {dimension_numbers = #tpu.dot_dimension_numbers<[2], [2], [1], [1], [0, 0, 0, 1, 1, 1], [0], [0]>} : vector<1x8x16xbf16>, vector<1x8x16xbf16>, vector<1x8x8xf32> -> vector<1x8x8xf32>
    "tpu.trace_stop"() : () -> ()
    %19 = vector.shape_cast %2 : vector<8x8xf32> to vector<1x8x8xf32>
    %20 = arith.addf %18, %19 : vector<1x8x8xf32>
    %cst_11 = arith.constant dense<0xFF800000> : vector<1x8xf32>
    %21 = vector.multi_reduction <maximumf>, %20, %cst_11 [2] : vector<1x8x8xf32> to vector<1x8xf32>
    %22 = vector.shape_cast %21 : vector<1x8xf32> to vector<1x8x1xf32>
    %23 = vector.broadcast %22 : vector<1x8x1xf32> to vector<1x8x8xf32>
    %24 = arith.subf %20, %23 : vector<1x8x8xf32>
    %25 = math.exp %24 : vector<1x8x8xf32>
    %cst_12 = arith.constant dense<0.000000e+00> : vector<1x8xf32>
    %26 = vector.multi_reduction <add>, %25, %cst_12 [2] : vector<1x8x8xf32> to vector<1x8xf32>
    %27 = vector.shape_cast %26 : vector<1x8xf32> to vector<1x8x1xf32>
    %28 = tpu.reciprocal %27 {approx = true} : vector<1x8x1xf32> -> vector<1x8x1xf32>
    %29 = vector.broadcast %28 : vector<1x8x1xf32> to vector<1x8x8xf32>
    %30 = arith.mulf %25, %29 : vector<1x8x8xf32>
    %31 = arith.truncf %30 : vector<1x8x8xf32> to vector<1x8x8xbf16>
    "tpu.trace_start"() <{level = 10 : i32, message = "bqk,bkd->bqd"}> : () -> ()
    %cst_13 = arith.constant dense<0.000000e+00> : vector<1x8x16xf32>
    %32 = tpu.matmul %31, %17, %cst_13 {dimension_numbers = #tpu.dot_dimension_numbers<[2], [1], [1], [2], [0, 0, 0, 1, 1, 2], [0], [0]>} : vector<1x8x8xbf16>, vector<1x8x16xbf16>, vector<1x8x16xf32> -> vector<1x8x16xf32>
    "tpu.trace_stop"() : () -> ()
    %33 = vector.extract_strided_slice %11 {offsets = [0, 0, 16], sizes = [1, 8, 16], strides = [1, 1, 1]} : vector<1x8x192xf32> to vector<1x8x16xf32>
    %34 = arith.truncf %33 : vector<1x8x16xf32> to vector<1x8x16xbf16>
    %35 = vector.extract_strided_slice %11 {offsets = [0, 0, 80], sizes = [1, 8, 16], strides = [1, 1, 1]} : vector<1x8x192xf32> to vector<1x8x16xf32>
    %36 = arith.truncf %35 : vector<1x8x16xf32> to vector<1x8x16xbf16>
    %37 = vector.extract_strided_slice %11 {offsets = [0, 0, 144], sizes = [1, 8, 16], strides = [1, 1, 1]} : vector<1x8x192xf32> to vector<1x8x16xf32>
    %38 = arith.truncf %37 : vector<1x8x16xf32> to vector<1x8x16xbf16>
    "tpu.trace_start"() <{level = 10 : i32, message = "bqd,bkd->bqk"}> : () -> ()
    %cst_14 = arith.constant dense<0.000000e+00> : vector<1x8x8xf32>
    %39 = tpu.matmul %34, %36, %cst_14 {dimension_numbers = #tpu.dot_dimension_numbers<[2], [2], [1], [1], [0, 0, 0, 1, 1, 1], [0], [0]>} : vector<1x8x16xbf16>, vector<1x8x16xbf16>, vector<1x8x8xf32> -> vector<1x8x8xf32>
    "tpu.trace_stop"() : () -> ()
    %40 = vector.shape_cast %2 : vector<8x8xf32> to vector<1x8x8xf32>
    %41 = arith.addf %39, %40 : vector<1x8x8xf32>
    %cst_15 = arith.constant dense<0xFF800000> : vector<1x8xf32>
    %42 = vector.multi_reduction <maximumf>, %41, %cst_15 [2] : vector<1x8x8xf32> to vector<1x8xf32>
    %43 = vector.shape_cast %42 : vector<1x8xf32> to vector<1x8x1xf32>
    %44 = vector.broadcast %43 : vector<1x8x1xf32> to vector<1x8x8xf32>
    %45 = arith.subf %41, %44 : vector<1x8x8xf32>
    %46 = math.exp %45 : vector<1x8x8xf32>
    %cst_16 = arith.constant dense<0.000000e+00> : vector<1x8xf32>
    %47 = vector.multi_reduction <add>, %46, %cst_16 [2] : vector<1x8x8xf32> to vector<1x8xf32>
    %48 = vector.shape_cast %47 : vector<1x8xf32> to vector<1x8x1xf32>
    %49 = tpu.reciprocal %48 {approx = true} : vector<1x8x1xf32> -> vector<1x8x1xf32>
    %50 = vector.broadcast %49 : vector<1x8x1xf32> to vector<1x8x8xf32>
    %51 = arith.mulf %46, %50 : vector<1x8x8xf32>
    %52 = arith.truncf %51 : vector<1x8x8xf32> to vector<1x8x8xbf16>
    "tpu.trace_start"() <{level = 10 : i32, message = "bqk,bkd->bqd"}> : () -> ()
    %cst_17 = arith.constant dense<0.000000e+00> : vector<1x8x16xf32>
    %53 = tpu.matmul %52, %38, %cst_17 {dimension_numbers = #tpu.dot_dimension_numbers<[2], [1], [1], [2], [0, 0, 0, 1, 1, 2], [0], [0]>} : vector<1x8x8xbf16>, vector<1x8x16xbf16>, vector<1x8x16xf32> -> vector<1x8x16xf32>
    "tpu.trace_stop"() : () -> ()
    %54 = vector.extract_strided_slice %11 {offsets = [0, 0, 32], sizes = [1, 8, 16], strides = [1, 1, 1]} : vector<1x8x192xf32> to vector<1x8x16xf32>
    %55 = arith.truncf %54 : vector<1x8x16xf32> to vector<1x8x16xbf16>
    %56 = vector.extract_strided_slice %11 {offsets = [0, 0, 96], sizes = [1, 8, 16], strides = [1, 1, 1]} : vector<1x8x192xf32> to vector<1x8x16xf32>
    %57 = arith.truncf %56 : vector<1x8x16xf32> to vector<1x8x16xbf16>
    %58 = vector.extract_strided_slice %11 {offsets = [0, 0, 160], sizes = [1, 8, 16], strides = [1, 1, 1]} : vector<1x8x192xf32> to vector<1x8x16xf32>
    %59 = arith.truncf %58 : vector<1x8x16xf32> to vector<1x8x16xbf16>
    "tpu.trace_start"() <{level = 10 : i32, message = "bqd,bkd->bqk"}> : () -> ()
    %cst_18 = arith.constant dense<0.000000e+00> : vector<1x8x8xf32>
    %60 = tpu.matmul %55, %57, %cst_18 {dimension_numbers = #tpu.dot_dimension_numbers<[2], [2], [1], [1], [0, 0, 0, 1, 1, 1], [0], [0]>} : vector<1x8x16xbf16>, vector<1x8x16xbf16>, vector<1x8x8xf32> -> vector<1x8x8xf32>
    "tpu.trace_stop"() : () -> ()
    %61 = vector.shape_cast %2 : vector<8x8xf32> to vector<1x8x8xf32>
    %62 = arith.addf %60, %61 : vector<1x8x8xf32>
    %cst_19 = arith.constant dense<0xFF800000> : vector<1x8xf32>
    %63 = vector.multi_reduction <maximumf>, %62, %cst_19 [2] : vector<1x8x8xf32> to vector<1x8xf32>
    %64 = vector.shape_cast %63 : vector<1x8xf32> to vector<1x8x1xf32>
    %65 = vector.broadcast %64 : vector<1x8x1xf32> to vector<1x8x8xf32>
    %66 = arith.subf %62, %65 : vector<1x8x8xf32>
    %67 = math.exp %66 : vector<1x8x8xf32>
    %cst_20 = arith.constant dense<0.000000e+00> : vector<1x8xf32>
    %68 = vector.multi_reduction <add>, %67, %cst_20 [2] : vector<1x8x8xf32> to vector<1x8xf32>
    %69 = vector.shape_cast %68 : vector<1x8xf32> to vector<1x8x1xf32>
    %70 = tpu.reciprocal %69 {approx = true} : vector<1x8x1xf32> -> vector<1x8x1xf32>
    %71 = vector.broadcast %70 : vector<1x8x1xf32> to vector<1x8x8xf32>
    %72 = arith.mulf %67, %71 : vector<1x8x8xf32>
    %73 = arith.truncf %72 : vector<1x8x8xf32> to vector<1x8x8xbf16>
    "tpu.trace_start"() <{level = 10 : i32, message = "bqk,bkd->bqd"}> : () -> ()
    %cst_21 = arith.constant dense<0.000000e+00> : vector<1x8x16xf32>
    %74 = tpu.matmul %73, %59, %cst_21 {dimension_numbers = #tpu.dot_dimension_numbers<[2], [1], [1], [2], [0, 0, 0, 1, 1, 2], [0], [0]>} : vector<1x8x8xbf16>, vector<1x8x16xbf16>, vector<1x8x16xf32> -> vector<1x8x16xf32>
    "tpu.trace_stop"() : () -> ()
    %75 = vector.extract_strided_slice %11 {offsets = [0, 0, 48], sizes = [1, 8, 16], strides = [1, 1, 1]} : vector<1x8x192xf32> to vector<1x8x16xf32>
    %76 = arith.truncf %75 : vector<1x8x16xf32> to vector<1x8x16xbf16>
    %77 = vector.extract_strided_slice %11 {offsets = [0, 0, 112], sizes = [1, 8, 16], strides = [1, 1, 1]} : vector<1x8x192xf32> to vector<1x8x16xf32>
    %78 = arith.truncf %77 : vector<1x8x16xf32> to vector<1x8x16xbf16>
    %79 = vector.extract_strided_slice %11 {offsets = [0, 0, 176], sizes = [1, 8, 16], strides = [1, 1, 1]} : vector<1x8x192xf32> to vector<1x8x16xf32>
    %80 = arith.truncf %79 : vector<1x8x16xf32> to vector<1x8x16xbf16>
    "tpu.trace_start"() <{level = 10 : i32, message = "bqd,bkd->bqk"}> : () -> ()
    %cst_22 = arith.constant dense<0.000000e+00> : vector<1x8x8xf32>
    %81 = tpu.matmul %76, %78, %cst_22 {dimension_numbers = #tpu.dot_dimension_numbers<[2], [2], [1], [1], [0, 0, 0, 1, 1, 1], [0], [0]>} : vector<1x8x16xbf16>, vector<1x8x16xbf16>, vector<1x8x8xf32> -> vector<1x8x8xf32>
    "tpu.trace_stop"() : () -> ()
    %82 = vector.shape_cast %2 : vector<8x8xf32> to vector<1x8x8xf32>
    %83 = arith.addf %81, %82 : vector<1x8x8xf32>
    %cst_23 = arith.constant dense<0xFF800000> : vector<1x8xf32>
    %84 = vector.multi_reduction <maximumf>, %83, %cst_23 [2] : vector<1x8x8xf32> to vector<1x8xf32>
    %85 = vector.shape_cast %84 : vector<1x8xf32> to vector<1x8x1xf32>
    %86 = vector.broadcast %85 : vector<1x8x1xf32> to vector<1x8x8xf32>
    %87 = arith.subf %83, %86 : vector<1x8x8xf32>
    %88 = math.exp %87 : vector<1x8x8xf32>
    %cst_24 = arith.constant dense<0.000000e+00> : vector<1x8xf32>
    %89 = vector.multi_reduction <add>, %88, %cst_24 [2] : vector<1x8x8xf32> to vector<1x8xf32>
    %90 = vector.shape_cast %89 : vector<1x8xf32> to vector<1x8x1xf32>
    %91 = tpu.reciprocal %90 {approx = true} : vector<1x8x1xf32> -> vector<1x8x1xf32>
    %92 = vector.broadcast %91 : vector<1x8x1xf32> to vector<1x8x8xf32>
    %93 = arith.mulf %88, %92 : vector<1x8x8xf32>
    %94 = arith.truncf %93 : vector<1x8x8xf32> to vector<1x8x8xbf16>
    "tpu.trace_start"() <{level = 10 : i32, message = "bqk,bkd->bqd"}> : () -> ()
    %cst_25 = arith.constant dense<0.000000e+00> : vector<1x8x16xf32>
    %95 = tpu.matmul %94, %80, %cst_25 {dimension_numbers = #tpu.dot_dimension_numbers<[2], [1], [1], [2], [0, 0, 0, 1, 1, 2], [0], [0]>} : vector<1x8x8xbf16>, vector<1x8x16xbf16>, vector<1x8x16xf32> -> vector<1x8x16xf32>
    "tpu.trace_stop"() : () -> ()
    %96 = tpu.concatenate %32, %53, %74, %95 in 2 : vector<1x8x16xf32>, vector<1x8x16xf32>, vector<1x8x16xf32>, vector<1x8x16xf32> -> vector<1x8x64xf32>
    %97 = vector.shape_cast %96 : vector<1x8x64xf32> to vector<8x64xf32>
    %98 = arith.truncf %97 : vector<8x64xf32> to vector<8x64xbf16>
    %c0_26 = arith.constant 0 : index
    %c0_27 = arith.constant 0 : index
    %c0_28 = arith.constant 0 : index
    %99 = vector.load %arg5[%c0_26, %c0_27, %c0_28] : memref<2x64x64xbf16, #tpu.memory_space<vmem>>, vector<1x64x64xbf16>
    %100 = vector.shape_cast %99 : vector<1x64x64xbf16> to vector<64x64xbf16>
    %cst_29 = arith.constant dense<0.000000e+00> : vector<8x64xf32>
    %101 = tpu.matmul %98, %100, %cst_29 {dimension_numbers = #tpu.dot_dimension_numbers<[1], [0], [0], [1], [0, 0, 1, 1], [], []>} : vector<8x64xbf16>, vector<64x64xbf16>, vector<8x64xf32> -> vector<8x64xf32>
    %c0_30 = arith.constant 0 : index
    %c0_31 = arith.constant 0 : index
    %c0_32 = arith.constant 0 : index
    %102 = vector.load %arg6[%c0_30, %c0_31, %c0_32] : memref<2x1x64xf32, #tpu.memory_space<vmem>>, vector<1x1x64xf32>
    %103 = vector.shape_cast %102 : vector<1x1x64xf32> to vector<1x64xf32>
    %104 = vector.broadcast %103 : vector<1x64xf32> to vector<8x64xf32>
    %105 = arith.addf %101, %104 : vector<8x64xf32>
    %106 = arith.addf %1, %105 : vector<8x64xf32>
    %c0_33 = arith.constant 0 : index
    %c0_34 = arith.constant 0 : index
    %c0_35 = arith.constant 0 : index
    %107 = vector.load %arg7[%c0_33, %c0_34, %c0_35] : memref<2x1x64xf32, #tpu.memory_space<vmem>>, vector<1x1x64xf32>
    %108 = vector.shape_cast %107 : vector<1x1x64xf32> to vector<1x64xf32>
    %c0_36 = arith.constant 0 : index
    %c0_37 = arith.constant 0 : index
    %c0_38 = arith.constant 0 : index
    %109 = vector.load %arg8[%c0_36, %c0_37, %c0_38] : memref<2x1x64xf32, #tpu.memory_space<vmem>>, vector<1x1x64xf32>
    %110 = vector.shape_cast %109 : vector<1x1x64xf32> to vector<1x64xf32>
    %cst_39 = arith.constant dense<0.000000e+00> : vector<8xf32>
    %111 = vector.multi_reduction <add>, %106, %cst_39 [1] : vector<8x64xf32> to vector<8xf32>
    %112 = vector.shape_cast %111 : vector<8xf32> to vector<8x1xf32>
    %cst_40 = arith.constant 6.400000e+01 : f32
    %113 = vector.broadcast %cst_40 : f32 to vector<8x1xf32>
    %114 = arith.divf %112, %113 : vector<8x1xf32>
    %115 = vector.broadcast %114 : vector<8x1xf32> to vector<8x64xf32>
    %116 = arith.subf %106, %115 : vector<8x64xf32>
    %117 = arith.mulf %116, %116 : vector<8x64xf32>
    %cst_41 = arith.constant dense<0.000000e+00> : vector<8xf32>
    %118 = vector.multi_reduction <add>, %117, %cst_41 [1] : vector<8x64xf32> to vector<8xf32>
    %119 = vector.shape_cast %118 : vector<8xf32> to vector<8x1xf32>
    %cst_42 = arith.constant 6.400000e+01 : f32
    %120 = vector.broadcast %cst_42 : f32 to vector<8x1xf32>
    %121 = arith.divf %119, %120 : vector<8x1xf32>
    %122 = vector.broadcast %114 : vector<8x1xf32> to vector<8x64xf32>
    %123 = arith.subf %106, %122 : vector<8x64xf32>
    %cst_43 = arith.constant 9.99999974E-6 : f32
    %124 = vector.broadcast %cst_43 : f32 to vector<8x1xf32>
    %125 = arith.addf %121, %124 : vector<8x1xf32>
    %126 = math.rsqrt %125 : vector<8x1xf32>
    %127 = vector.broadcast %126 : vector<8x1xf32> to vector<8x64xf32>
    %128 = arith.mulf %123, %127 : vector<8x64xf32>
    %129 = vector.broadcast %108 : vector<1x64xf32> to vector<8x64xf32>
    %130 = arith.mulf %128, %129 : vector<8x64xf32>
    %131 = vector.broadcast %110 : vector<1x64xf32> to vector<8x64xf32>
    %132 = arith.addf %130, %131 : vector<8x64xf32>
    %133 = arith.truncf %132 : vector<8x64xf32> to vector<8x64xbf16>
    %c0_44 = arith.constant 0 : index
    %c0_45 = arith.constant 0 : index
    %c0_46 = arith.constant 0 : index
    %134 = vector.load %arg11[%c0_44, %c0_45, %c0_46] : memref<2x64x256xbf16, #tpu.memory_space<vmem>>, vector<1x64x256xbf16>
    %135 = vector.shape_cast %134 : vector<1x64x256xbf16> to vector<64x256xbf16>
    %cst_47 = arith.constant dense<0.000000e+00> : vector<8x256xf32>
    %136 = tpu.matmul %133, %135, %cst_47 {dimension_numbers = #tpu.dot_dimension_numbers<[1], [0], [0], [1], [0, 0, 1, 1], [], []>} : vector<8x64xbf16>, vector<64x256xbf16>, vector<8x256xf32> -> vector<8x256xf32>
    %c0_48 = arith.constant 0 : index
    %c0_49 = arith.constant 0 : index
    %c0_50 = arith.constant 0 : index
    %137 = vector.load %arg12[%c0_48, %c0_49, %c0_50] : memref<2x1x256xf32, #tpu.memory_space<vmem>>, vector<1x1x256xf32>
    %138 = vector.shape_cast %137 : vector<1x1x256xf32> to vector<1x256xf32>
    %139 = vector.broadcast %138 : vector<1x256xf32> to vector<8x256xf32>
    %140 = arith.addf %136, %139 : vector<8x256xf32>
    %cst_51 = arith.constant 0.000000e+00 : f32
    %141 = vector.broadcast %cst_51 : f32 to vector<8x256xf32>
    %142 = arith.maximumf %140, %141 : vector<8x256xf32>
    %143 = arith.truncf %142 : vector<8x256xf32> to vector<8x256xbf16>
    %c0_52 = arith.constant 0 : index
    %c0_53 = arith.constant 0 : index
    %c0_54 = arith.constant 0 : index
    %144 = vector.load %arg13[%c0_52, %c0_53, %c0_54] : memref<2x256x64xbf16, #tpu.memory_space<vmem>>, vector<1x256x64xbf16>
    %145 = vector.shape_cast %144 : vector<1x256x64xbf16> to vector<256x64xbf16>
    %cst_55 = arith.constant dense<0.000000e+00> : vector<8x64xf32>
    %146 = tpu.matmul %143, %145, %cst_55 {dimension_numbers = #tpu.dot_dimension_numbers<[1], [0], [0], [1], [0, 0, 1, 1], [], []>} : vector<8x256xbf16>, vector<256x64xbf16>, vector<8x64xf32> -> vector<8x64xf32>
    %c0_56 = arith.constant 0 : index
    %c0_57 = arith.constant 0 : index
    %c0_58 = arith.constant 0 : index
    %147 = vector.load %arg14[%c0_56, %c0_57, %c0_58] : memref<2x1x64xf32, #tpu.memory_space<vmem>>, vector<1x1x64xf32>
    %148 = vector.shape_cast %147 : vector<1x1x64xf32> to vector<1x64xf32>
    %149 = vector.broadcast %148 : vector<1x64xf32> to vector<8x64xf32>
    %150 = arith.addf %146, %149 : vector<8x64xf32>
    %151 = arith.addf %132, %150 : vector<8x64xf32>
    %c0_59 = arith.constant 0 : index
    %c0_60 = arith.constant 0 : index
    %c0_61 = arith.constant 0 : index
    %152 = vector.load %arg9[%c0_59, %c0_60, %c0_61] : memref<2x1x64xf32, #tpu.memory_space<vmem>>, vector<1x1x64xf32>
    %153 = vector.shape_cast %152 : vector<1x1x64xf32> to vector<1x64xf32>
    %c0_62 = arith.constant 0 : index
    %c0_63 = arith.constant 0 : index
    %c0_64 = arith.constant 0 : index
    %154 = vector.load %arg10[%c0_62, %c0_63, %c0_64] : memref<2x1x64xf32, #tpu.memory_space<vmem>>, vector<1x1x64xf32>
    %155 = vector.shape_cast %154 : vector<1x1x64xf32> to vector<1x64xf32>
    %cst_65 = arith.constant dense<0.000000e+00> : vector<8xf32>
    %156 = vector.multi_reduction <add>, %151, %cst_65 [1] : vector<8x64xf32> to vector<8xf32>
    %157 = vector.shape_cast %156 : vector<8xf32> to vector<8x1xf32>
    %cst_66 = arith.constant 6.400000e+01 : f32
    %158 = vector.broadcast %cst_66 : f32 to vector<8x1xf32>
    %159 = arith.divf %157, %158 : vector<8x1xf32>
    %160 = vector.broadcast %159 : vector<8x1xf32> to vector<8x64xf32>
    %161 = arith.subf %151, %160 : vector<8x64xf32>
    %162 = arith.mulf %161, %161 : vector<8x64xf32>
    %cst_67 = arith.constant dense<0.000000e+00> : vector<8xf32>
    %163 = vector.multi_reduction <add>, %162, %cst_67 [1] : vector<8x64xf32> to vector<8xf32>
    %164 = vector.shape_cast %163 : vector<8xf32> to vector<8x1xf32>
    %cst_68 = arith.constant 6.400000e+01 : f32
    %165 = vector.broadcast %cst_68 : f32 to vector<8x1xf32>
    %166 = arith.divf %164, %165 : vector<8x1xf32>
    %167 = vector.broadcast %159 : vector<8x1xf32> to vector<8x64xf32>
    %168 = arith.subf %151, %167 : vector<8x64xf32>
    %cst_69 = arith.constant 9.99999974E-6 : f32
    %169 = vector.broadcast %cst_69 : f32 to vector<8x1xf32>
    %170 = arith.addf %166, %169 : vector<8x1xf32>
    %171 = math.rsqrt %170 : vector<8x1xf32>
    %172 = vector.broadcast %171 : vector<8x1xf32> to vector<8x64xf32>
    %173 = arith.mulf %168, %172 : vector<8x64xf32>
    %174 = vector.broadcast %153 : vector<1x64xf32> to vector<8x64xf32>
    %175 = arith.mulf %173, %174 : vector<8x64xf32>
    %176 = vector.broadcast %155 : vector<1x64xf32> to vector<8x64xf32>
    %177 = arith.addf %175, %176 : vector<8x64xf32>
    %178 = arith.truncf %177 : vector<8x64xf32> to vector<8x64xbf16>
    %c1 = arith.constant 1 : index
    %c0_70 = arith.constant 0 : index
    %c0_71 = arith.constant 0 : index
    %179 = vector.load %arg3[%c1, %c0_70, %c0_71] : memref<2x64x192xbf16, #tpu.memory_space<vmem>>, vector<1x64x192xbf16>
    %180 = vector.shape_cast %179 : vector<1x64x192xbf16> to vector<64x192xbf16>
    %cst_72 = arith.constant dense<0.000000e+00> : vector<8x192xf32>
    %181 = tpu.matmul %178, %180, %cst_72 {dimension_numbers = #tpu.dot_dimension_numbers<[1], [0], [0], [1], [0, 0, 1, 1], [], []>} : vector<8x64xbf16>, vector<64x192xbf16>, vector<8x192xf32> -> vector<8x192xf32>
    %c1_73 = arith.constant 1 : index
    %c0_74 = arith.constant 0 : index
    %c0_75 = arith.constant 0 : index
    %182 = vector.load %arg4[%c1_73, %c0_74, %c0_75] : memref<2x1x192xf32, #tpu.memory_space<vmem>>, vector<1x1x192xf32>
    %183 = vector.shape_cast %182 : vector<1x1x192xf32> to vector<1x192xf32>
    %184 = vector.broadcast %183 : vector<1x192xf32> to vector<8x192xf32>
    %185 = arith.addf %181, %184 : vector<8x192xf32>
    %186 = vector.shape_cast %185 : vector<8x192xf32> to vector<1x8x192xf32>
    %187 = vector.extract_strided_slice %186 {offsets = [0, 0, 0], sizes = [1, 8, 16], strides = [1, 1, 1]} : vector<1x8x192xf32> to vector<1x8x16xf32>
    %188 = arith.truncf %187 : vector<1x8x16xf32> to vector<1x8x16xbf16>
    %189 = vector.extract_strided_slice %186 {offsets = [0, 0, 64], sizes = [1, 8, 16], strides = [1, 1, 1]} : vector<1x8x192xf32> to vector<1x8x16xf32>
    %190 = arith.truncf %189 : vector<1x8x16xf32> to vector<1x8x16xbf16>
    %191 = vector.extract_strided_slice %186 {offsets = [0, 0, 128], sizes = [1, 8, 16], strides = [1, 1, 1]} : vector<1x8x192xf32> to vector<1x8x16xf32>
    %192 = arith.truncf %191 : vector<1x8x16xf32> to vector<1x8x16xbf16>
    "tpu.trace_start"() <{level = 10 : i32, message = "bqd,bkd->bqk"}> : () -> ()
    %cst_76 = arith.constant dense<0.000000e+00> : vector<1x8x8xf32>
    %193 = tpu.matmul %188, %190, %cst_76 {dimension_numbers = #tpu.dot_dimension_numbers<[2], [2], [1], [1], [0, 0, 0, 1, 1, 1], [0], [0]>} : vector<1x8x16xbf16>, vector<1x8x16xbf16>, vector<1x8x8xf32> -> vector<1x8x8xf32>
    "tpu.trace_stop"() : () -> ()
    %194 = vector.shape_cast %2 : vector<8x8xf32> to vector<1x8x8xf32>
    %195 = arith.addf %193, %194 : vector<1x8x8xf32>
    %cst_77 = arith.constant dense<0xFF800000> : vector<1x8xf32>
    %196 = vector.multi_reduction <maximumf>, %195, %cst_77 [2] : vector<1x8x8xf32> to vector<1x8xf32>
    %197 = vector.shape_cast %196 : vector<1x8xf32> to vector<1x8x1xf32>
    %198 = vector.broadcast %197 : vector<1x8x1xf32> to vector<1x8x8xf32>
    %199 = arith.subf %195, %198 : vector<1x8x8xf32>
    %200 = math.exp %199 : vector<1x8x8xf32>
    %cst_78 = arith.constant dense<0.000000e+00> : vector<1x8xf32>
    %201 = vector.multi_reduction <add>, %200, %cst_78 [2] : vector<1x8x8xf32> to vector<1x8xf32>
    %202 = vector.shape_cast %201 : vector<1x8xf32> to vector<1x8x1xf32>
    %203 = tpu.reciprocal %202 {approx = true} : vector<1x8x1xf32> -> vector<1x8x1xf32>
    %204 = vector.broadcast %203 : vector<1x8x1xf32> to vector<1x8x8xf32>
    %205 = arith.mulf %200, %204 : vector<1x8x8xf32>
    %206 = arith.truncf %205 : vector<1x8x8xf32> to vector<1x8x8xbf16>
    "tpu.trace_start"() <{level = 10 : i32, message = "bqk,bkd->bqd"}> : () -> ()
    %cst_79 = arith.constant dense<0.000000e+00> : vector<1x8x16xf32>
    %207 = tpu.matmul %206, %192, %cst_79 {dimension_numbers = #tpu.dot_dimension_numbers<[2], [1], [1], [2], [0, 0, 0, 1, 1, 2], [0], [0]>} : vector<1x8x8xbf16>, vector<1x8x16xbf16>, vector<1x8x16xf32> -> vector<1x8x16xf32>
    "tpu.trace_stop"() : () -> ()
    %208 = vector.extract_strided_slice %186 {offsets = [0, 0, 16], sizes = [1, 8, 16], strides = [1, 1, 1]} : vector<1x8x192xf32> to vector<1x8x16xf32>
    %209 = arith.truncf %208 : vector<1x8x16xf32> to vector<1x8x16xbf16>
    %210 = vector.extract_strided_slice %186 {offsets = [0, 0, 80], sizes = [1, 8, 16], strides = [1, 1, 1]} : vector<1x8x192xf32> to vector<1x8x16xf32>
    %211 = arith.truncf %210 : vector<1x8x16xf32> to vector<1x8x16xbf16>
    %212 = vector.extract_strided_slice %186 {offsets = [0, 0, 144], sizes = [1, 8, 16], strides = [1, 1, 1]} : vector<1x8x192xf32> to vector<1x8x16xf32>
    %213 = arith.truncf %212 : vector<1x8x16xf32> to vector<1x8x16xbf16>
    "tpu.trace_start"() <{level = 10 : i32, message = "bqd,bkd->bqk"}> : () -> ()
    %cst_80 = arith.constant dense<0.000000e+00> : vector<1x8x8xf32>
    %214 = tpu.matmul %209, %211, %cst_80 {dimension_numbers = #tpu.dot_dimension_numbers<[2], [2], [1], [1], [0, 0, 0, 1, 1, 1], [0], [0]>} : vector<1x8x16xbf16>, vector<1x8x16xbf16>, vector<1x8x8xf32> -> vector<1x8x8xf32>
    "tpu.trace_stop"() : () -> ()
    %215 = vector.shape_cast %2 : vector<8x8xf32> to vector<1x8x8xf32>
    %216 = arith.addf %214, %215 : vector<1x8x8xf32>
    %cst_81 = arith.constant dense<0xFF800000> : vector<1x8xf32>
    %217 = vector.multi_reduction <maximumf>, %216, %cst_81 [2] : vector<1x8x8xf32> to vector<1x8xf32>
    %218 = vector.shape_cast %217 : vector<1x8xf32> to vector<1x8x1xf32>
    %219 = vector.broadcast %218 : vector<1x8x1xf32> to vector<1x8x8xf32>
    %220 = arith.subf %216, %219 : vector<1x8x8xf32>
    %221 = math.exp %220 : vector<1x8x8xf32>
    %cst_82 = arith.constant dense<0.000000e+00> : vector<1x8xf32>
    %222 = vector.multi_reduction <add>, %221, %cst_82 [2] : vector<1x8x8xf32> to vector<1x8xf32>
    %223 = vector.shape_cast %222 : vector<1x8xf32> to vector<1x8x1xf32>
    %224 = tpu.reciprocal %223 {approx = true} : vector<1x8x1xf32> -> vector<1x8x1xf32>
    %225 = vector.broadcast %224 : vector<1x8x1xf32> to vector<1x8x8xf32>
    %226 = arith.mulf %221, %225 : vector<1x8x8xf32>
    %227 = arith.truncf %226 : vector<1x8x8xf32> to vector<1x8x8xbf16>
    "tpu.trace_start"() <{level = 10 : i32, message = "bqk,bkd->bqd"}> : () -> ()
    %cst_83 = arith.constant dense<0.000000e+00> : vector<1x8x16xf32>
    %228 = tpu.matmul %227, %213, %cst_83 {dimension_numbers = #tpu.dot_dimension_numbers<[2], [1], [1], [2], [0, 0, 0, 1, 1, 2], [0], [0]>} : vector<1x8x8xbf16>, vector<1x8x16xbf16>, vector<1x8x16xf32> -> vector<1x8x16xf32>
    "tpu.trace_stop"() : () -> ()
    %229 = vector.extract_strided_slice %186 {offsets = [0, 0, 32], sizes = [1, 8, 16], strides = [1, 1, 1]} : vector<1x8x192xf32> to vector<1x8x16xf32>
    %230 = arith.truncf %229 : vector<1x8x16xf32> to vector<1x8x16xbf16>
    %231 = vector.extract_strided_slice %186 {offsets = [0, 0, 96], sizes = [1, 8, 16], strides = [1, 1, 1]} : vector<1x8x192xf32> to vector<1x8x16xf32>
    %232 = arith.truncf %231 : vector<1x8x16xf32> to vector<1x8x16xbf16>
    %233 = vector.extract_strided_slice %186 {offsets = [0, 0, 160], sizes = [1, 8, 16], strides = [1, 1, 1]} : vector<1x8x192xf32> to vector<1x8x16xf32>
    %234 = arith.truncf %233 : vector<1x8x16xf32> to vector<1x8x16xbf16>
    "tpu.trace_start"() <{level = 10 : i32, message = "bqd,bkd->bqk"}> : () -> ()
    %cst_84 = arith.constant dense<0.000000e+00> : vector<1x8x8xf32>
    %235 = tpu.matmul %230, %232, %cst_84 {dimension_numbers = #tpu.dot_dimension_numbers<[2], [2], [1], [1], [0, 0, 0, 1, 1, 1], [0], [0]>} : vector<1x8x16xbf16>, vector<1x8x16xbf16>, vector<1x8x8xf32> -> vector<1x8x8xf32>
    "tpu.trace_stop"() : () -> ()
    %236 = vector.shape_cast %2 : vector<8x8xf32> to vector<1x8x8xf32>
    %237 = arith.addf %235, %236 : vector<1x8x8xf32>
    %cst_85 = arith.constant dense<0xFF800000> : vector<1x8xf32>
    %238 = vector.multi_reduction <maximumf>, %237, %cst_85 [2] : vector<1x8x8xf32> to vector<1x8xf32>
    %239 = vector.shape_cast %238 : vector<1x8xf32> to vector<1x8x1xf32>
    %240 = vector.broadcast %239 : vector<1x8x1xf32> to vector<1x8x8xf32>
    %241 = arith.subf %237, %240 : vector<1x8x8xf32>
    %242 = math.exp %241 : vector<1x8x8xf32>
    %cst_86 = arith.constant dense<0.000000e+00> : vector<1x8xf32>
    %243 = vector.multi_reduction <add>, %242, %cst_86 [2] : vector<1x8x8xf32> to vector<1x8xf32>
    %244 = vector.shape_cast %243 : vector<1x8xf32> to vector<1x8x1xf32>
    %245 = tpu.reciprocal %244 {approx = true} : vector<1x8x1xf32> -> vector<1x8x1xf32>
    %246 = vector.broadcast %245 : vector<1x8x1xf32> to vector<1x8x8xf32>
    %247 = arith.mulf %242, %246 : vector<1x8x8xf32>
    %248 = arith.truncf %247 : vector<1x8x8xf32> to vector<1x8x8xbf16>
    "tpu.trace_start"() <{level = 10 : i32, message = "bqk,bkd->bqd"}> : () -> ()
    %cst_87 = arith.constant dense<0.000000e+00> : vector<1x8x16xf32>
    %249 = tpu.matmul %248, %234, %cst_87 {dimension_numbers = #tpu.dot_dimension_numbers<[2], [1], [1], [2], [0, 0, 0, 1, 1, 2], [0], [0]>} : vector<1x8x8xbf16>, vector<1x8x16xbf16>, vector<1x8x16xf32> -> vector<1x8x16xf32>
    "tpu.trace_stop"() : () -> ()
    %250 = vector.extract_strided_slice %186 {offsets = [0, 0, 48], sizes = [1, 8, 16], strides = [1, 1, 1]} : vector<1x8x192xf32> to vector<1x8x16xf32>
    %251 = arith.truncf %250 : vector<1x8x16xf32> to vector<1x8x16xbf16>
    %252 = vector.extract_strided_slice %186 {offsets = [0, 0, 112], sizes = [1, 8, 16], strides = [1, 1, 1]} : vector<1x8x192xf32> to vector<1x8x16xf32>
    %253 = arith.truncf %252 : vector<1x8x16xf32> to vector<1x8x16xbf16>
    %254 = vector.extract_strided_slice %186 {offsets = [0, 0, 176], sizes = [1, 8, 16], strides = [1, 1, 1]} : vector<1x8x192xf32> to vector<1x8x16xf32>
    %255 = arith.truncf %254 : vector<1x8x16xf32> to vector<1x8x16xbf16>
    "tpu.trace_start"() <{level = 10 : i32, message = "bqd,bkd->bqk"}> : () -> ()
    %cst_88 = arith.constant dense<0.000000e+00> : vector<1x8x8xf32>
    %256 = tpu.matmul %251, %253, %cst_88 {dimension_numbers = #tpu.dot_dimension_numbers<[2], [2], [1], [1], [0, 0, 0, 1, 1, 1], [0], [0]>} : vector<1x8x16xbf16>, vector<1x8x16xbf16>, vector<1x8x8xf32> -> vector<1x8x8xf32>
    "tpu.trace_stop"() : () -> ()
    %257 = vector.shape_cast %2 : vector<8x8xf32> to vector<1x8x8xf32>
    %258 = arith.addf %256, %257 : vector<1x8x8xf32>
    %cst_89 = arith.constant dense<0xFF800000> : vector<1x8xf32>
    %259 = vector.multi_reduction <maximumf>, %258, %cst_89 [2] : vector<1x8x8xf32> to vector<1x8xf32>
    %260 = vector.shape_cast %259 : vector<1x8xf32> to vector<1x8x1xf32>
    %261 = vector.broadcast %260 : vector<1x8x1xf32> to vector<1x8x8xf32>
    %262 = arith.subf %258, %261 : vector<1x8x8xf32>
    %263 = math.exp %262 : vector<1x8x8xf32>
    %cst_90 = arith.constant dense<0.000000e+00> : vector<1x8xf32>
    %264 = vector.multi_reduction <add>, %263, %cst_90 [2] : vector<1x8x8xf32> to vector<1x8xf32>
    %265 = vector.shape_cast %264 : vector<1x8xf32> to vector<1x8x1xf32>
    %266 = tpu.reciprocal %265 {approx = true} : vector<1x8x1xf32> -> vector<1x8x1xf32>
    %267 = vector.broadcast %266 : vector<1x8x1xf32> to vector<1x8x8xf32>
    %268 = arith.mulf %263, %267 : vector<1x8x8xf32>
    %269 = arith.truncf %268 : vector<1x8x8xf32> to vector<1x8x8xbf16>
    "tpu.trace_start"() <{level = 10 : i32, message = "bqk,bkd->bqd"}> : () -> ()
    %cst_91 = arith.constant dense<0.000000e+00> : vector<1x8x16xf32>
    %270 = tpu.matmul %269, %255, %cst_91 {dimension_numbers = #tpu.dot_dimension_numbers<[2], [1], [1], [2], [0, 0, 0, 1, 1, 2], [0], [0]>} : vector<1x8x8xbf16>, vector<1x8x16xbf16>, vector<1x8x16xf32> -> vector<1x8x16xf32>
    "tpu.trace_stop"() : () -> ()
    %271 = tpu.concatenate %207, %228, %249, %270 in 2 : vector<1x8x16xf32>, vector<1x8x16xf32>, vector<1x8x16xf32>, vector<1x8x16xf32> -> vector<1x8x64xf32>
    %272 = vector.shape_cast %271 : vector<1x8x64xf32> to vector<8x64xf32>
    %273 = arith.truncf %272 : vector<8x64xf32> to vector<8x64xbf16>
    %c1_92 = arith.constant 1 : index
    %c0_93 = arith.constant 0 : index
    %c0_94 = arith.constant 0 : index
    %274 = vector.load %arg5[%c1_92, %c0_93, %c0_94] : memref<2x64x64xbf16, #tpu.memory_space<vmem>>, vector<1x64x64xbf16>
    %275 = vector.shape_cast %274 : vector<1x64x64xbf16> to vector<64x64xbf16>
    %cst_95 = arith.constant dense<0.000000e+00> : vector<8x64xf32>
    %276 = tpu.matmul %273, %275, %cst_95 {dimension_numbers = #tpu.dot_dimension_numbers<[1], [0], [0], [1], [0, 0, 1, 1], [], []>} : vector<8x64xbf16>, vector<64x64xbf16>, vector<8x64xf32> -> vector<8x64xf32>
    %c1_96 = arith.constant 1 : index
    %c0_97 = arith.constant 0 : index
    %c0_98 = arith.constant 0 : index
    %277 = vector.load %arg6[%c1_96, %c0_97, %c0_98] : memref<2x1x64xf32, #tpu.memory_space<vmem>>, vector<1x1x64xf32>
    %278 = vector.shape_cast %277 : vector<1x1x64xf32> to vector<1x64xf32>
    %279 = vector.broadcast %278 : vector<1x64xf32> to vector<8x64xf32>
    %280 = arith.addf %276, %279 : vector<8x64xf32>
    %281 = arith.addf %177, %280 : vector<8x64xf32>
    %c1_99 = arith.constant 1 : index
    %c0_100 = arith.constant 0 : index
    %c0_101 = arith.constant 0 : index
    %282 = vector.load %arg7[%c1_99, %c0_100, %c0_101] : memref<2x1x64xf32, #tpu.memory_space<vmem>>, vector<1x1x64xf32>
    %283 = vector.shape_cast %282 : vector<1x1x64xf32> to vector<1x64xf32>
    %c1_102 = arith.constant 1 : index
    %c0_103 = arith.constant 0 : index
    %c0_104 = arith.constant 0 : index
    %284 = vector.load %arg8[%c1_102, %c0_103, %c0_104] : memref<2x1x64xf32, #tpu.memory_space<vmem>>, vector<1x1x64xf32>
    %285 = vector.shape_cast %284 : vector<1x1x64xf32> to vector<1x64xf32>
    %cst_105 = arith.constant dense<0.000000e+00> : vector<8xf32>
    %286 = vector.multi_reduction <add>, %281, %cst_105 [1] : vector<8x64xf32> to vector<8xf32>
    %287 = vector.shape_cast %286 : vector<8xf32> to vector<8x1xf32>
    %cst_106 = arith.constant 6.400000e+01 : f32
    %288 = vector.broadcast %cst_106 : f32 to vector<8x1xf32>
    %289 = arith.divf %287, %288 : vector<8x1xf32>
    %290 = vector.broadcast %289 : vector<8x1xf32> to vector<8x64xf32>
    %291 = arith.subf %281, %290 : vector<8x64xf32>
    %292 = arith.mulf %291, %291 : vector<8x64xf32>
    %cst_107 = arith.constant dense<0.000000e+00> : vector<8xf32>
    %293 = vector.multi_reduction <add>, %292, %cst_107 [1] : vector<8x64xf32> to vector<8xf32>
    %294 = vector.shape_cast %293 : vector<8xf32> to vector<8x1xf32>
    %cst_108 = arith.constant 6.400000e+01 : f32
    %295 = vector.broadcast %cst_108 : f32 to vector<8x1xf32>
    %296 = arith.divf %294, %295 : vector<8x1xf32>
    %297 = vector.broadcast %289 : vector<8x1xf32> to vector<8x64xf32>
    %298 = arith.subf %281, %297 : vector<8x64xf32>
    %cst_109 = arith.constant 9.99999974E-6 : f32
    %299 = vector.broadcast %cst_109 : f32 to vector<8x1xf32>
    %300 = arith.addf %296, %299 : vector<8x1xf32>
    %301 = math.rsqrt %300 : vector<8x1xf32>
    %302 = vector.broadcast %301 : vector<8x1xf32> to vector<8x64xf32>
    %303 = arith.mulf %298, %302 : vector<8x64xf32>
    %304 = vector.broadcast %283 : vector<1x64xf32> to vector<8x64xf32>
    %305 = arith.mulf %303, %304 : vector<8x64xf32>
    %306 = vector.broadcast %285 : vector<1x64xf32> to vector<8x64xf32>
    %307 = arith.addf %305, %306 : vector<8x64xf32>
    %308 = arith.truncf %307 : vector<8x64xf32> to vector<8x64xbf16>
    %c1_110 = arith.constant 1 : index
    %c0_111 = arith.constant 0 : index
    %c0_112 = arith.constant 0 : index
    %309 = vector.load %arg11[%c1_110, %c0_111, %c0_112] : memref<2x64x256xbf16, #tpu.memory_space<vmem>>, vector<1x64x256xbf16>
    %310 = vector.shape_cast %309 : vector<1x64x256xbf16> to vector<64x256xbf16>
    %cst_113 = arith.constant dense<0.000000e+00> : vector<8x256xf32>
    %311 = tpu.matmul %308, %310, %cst_113 {dimension_numbers = #tpu.dot_dimension_numbers<[1], [0], [0], [1], [0, 0, 1, 1], [], []>} : vector<8x64xbf16>, vector<64x256xbf16>, vector<8x256xf32> -> vector<8x256xf32>
    %c1_114 = arith.constant 1 : index
    %c0_115 = arith.constant 0 : index
    %c0_116 = arith.constant 0 : index
    %312 = vector.load %arg12[%c1_114, %c0_115, %c0_116] : memref<2x1x256xf32, #tpu.memory_space<vmem>>, vector<1x1x256xf32>
    %313 = vector.shape_cast %312 : vector<1x1x256xf32> to vector<1x256xf32>
    %314 = vector.broadcast %313 : vector<1x256xf32> to vector<8x256xf32>
    %315 = arith.addf %311, %314 : vector<8x256xf32>
    %cst_117 = arith.constant 0.000000e+00 : f32
    %316 = vector.broadcast %cst_117 : f32 to vector<8x256xf32>
    %317 = arith.maximumf %315, %316 : vector<8x256xf32>
    %318 = arith.truncf %317 : vector<8x256xf32> to vector<8x256xbf16>
    %c1_118 = arith.constant 1 : index
    %c0_119 = arith.constant 0 : index
    %c0_120 = arith.constant 0 : index
    %319 = vector.load %arg13[%c1_118, %c0_119, %c0_120] : memref<2x256x64xbf16, #tpu.memory_space<vmem>>, vector<1x256x64xbf16>
    %320 = vector.shape_cast %319 : vector<1x256x64xbf16> to vector<256x64xbf16>
    %cst_121 = arith.constant dense<0.000000e+00> : vector<8x64xf32>
    %321 = tpu.matmul %318, %320, %cst_121 {dimension_numbers = #tpu.dot_dimension_numbers<[1], [0], [0], [1], [0, 0, 1, 1], [], []>} : vector<8x256xbf16>, vector<256x64xbf16>, vector<8x64xf32> -> vector<8x64xf32>
    %c1_122 = arith.constant 1 : index
    %c0_123 = arith.constant 0 : index
    %c0_124 = arith.constant 0 : index
    %322 = vector.load %arg14[%c1_122, %c0_123, %c0_124] : memref<2x1x64xf32, #tpu.memory_space<vmem>>, vector<1x1x64xf32>
    %323 = vector.shape_cast %322 : vector<1x1x64xf32> to vector<1x64xf32>
    %324 = vector.broadcast %323 : vector<1x64xf32> to vector<8x64xf32>
    %325 = arith.addf %321, %324 : vector<8x64xf32>
    %326 = arith.addf %307, %325 : vector<8x64xf32>
    %c1_125 = arith.constant 1 : index
    %c0_126 = arith.constant 0 : index
    %c0_127 = arith.constant 0 : index
    %327 = vector.load %arg9[%c1_125, %c0_126, %c0_127] : memref<2x1x64xf32, #tpu.memory_space<vmem>>, vector<1x1x64xf32>
    %328 = vector.shape_cast %327 : vector<1x1x64xf32> to vector<1x64xf32>
    %c1_128 = arith.constant 1 : index
    %c0_129 = arith.constant 0 : index
    %c0_130 = arith.constant 0 : index
    %329 = vector.load %arg10[%c1_128, %c0_129, %c0_130] : memref<2x1x64xf32, #tpu.memory_space<vmem>>, vector<1x1x64xf32>
    %330 = vector.shape_cast %329 : vector<1x1x64xf32> to vector<1x64xf32>
    %cst_131 = arith.constant dense<0.000000e+00> : vector<8xf32>
    %331 = vector.multi_reduction <add>, %326, %cst_131 [1] : vector<8x64xf32> to vector<8xf32>
    %332 = vector.shape_cast %331 : vector<8xf32> to vector<8x1xf32>
    %cst_132 = arith.constant 6.400000e+01 : f32
    %333 = vector.broadcast %cst_132 : f32 to vector<8x1xf32>
    %334 = arith.divf %332, %333 : vector<8x1xf32>
    %335 = vector.broadcast %334 : vector<8x1xf32> to vector<8x64xf32>
    %336 = arith.subf %326, %335 : vector<8x64xf32>
    %337 = arith.mulf %336, %336 : vector<8x64xf32>
    %cst_133 = arith.constant dense<0.000000e+00> : vector<8xf32>
    %338 = vector.multi_reduction <add>, %337, %cst_133 [1] : vector<8x64xf32> to vector<8xf32>
    %339 = vector.shape_cast %338 : vector<8xf32> to vector<8x1xf32>
    %cst_134 = arith.constant 6.400000e+01 : f32
    %340 = vector.broadcast %cst_134 : f32 to vector<8x1xf32>
    %341 = arith.divf %339, %340 : vector<8x1xf32>
    %342 = vector.broadcast %334 : vector<8x1xf32> to vector<8x64xf32>
    %343 = arith.subf %326, %342 : vector<8x64xf32>
    %cst_135 = arith.constant 9.99999974E-6 : f32
    %344 = vector.broadcast %cst_135 : f32 to vector<8x1xf32>
    %345 = arith.addf %341, %344 : vector<8x1xf32>
    %346 = math.rsqrt %345 : vector<8x1xf32>
    %347 = vector.broadcast %346 : vector<8x1xf32> to vector<8x64xf32>
    %348 = arith.mulf %343, %347 : vector<8x64xf32>
    %349 = vector.broadcast %328 : vector<1x64xf32> to vector<8x64xf32>
    %350 = arith.mulf %348, %349 : vector<8x64xf32>
    %351 = vector.broadcast %330 : vector<1x64xf32> to vector<8x64xf32>
    %352 = arith.addf %350, %351 : vector<8x64xf32>
    %353 = vector.shape_cast %352 : vector<8x64xf32> to vector<1x8x64xf32>
    %354 = vector.extract_strided_slice %353 {offsets = [0, 7, 0], sizes = [1, 1, 64], strides = [1, 1, 1]} : vector<1x8x64xf32> to vector<1x1x64xf32>
    %355 = vector.shape_cast %354 : vector<1x1x64xf32> to vector<1x64xf32>
    %c0_136 = arith.constant 0 : index
    %c0_137 = arith.constant 0 : index
    %356 = vector.load %arg15[%c0_136, %c0_137] : memref<1x64xf32, #tpu.memory_space<vmem>>, vector<1x64xf32>
    %357 = arith.mulf %355, %356 : vector<1x64xf32>
    %cst_138 = arith.constant dense<0.000000e+00> : vector<1xf32>
    %358 = vector.multi_reduction <add>, %357, %cst_138 [1] : vector<1x64xf32> to vector<1xf32>
    %359 = vector.shape_cast %358 : vector<1xf32> to vector<1x1xf32>
    %c0_139 = arith.constant 0 : index
    %c0_140 = arith.constant 0 : index
    %360 = vector.load %arg16[%c0_139, %c0_140] : memref<1x1xf32, #tpu.memory_space<vmem>>, vector<1x1xf32>
    %361 = arith.addf %359, %360 : vector<1x1xf32>
    %362 = vector.shape_cast %361 : vector<1x1xf32> to vector<1x1x1xf32>
    %c0_141 = arith.constant 0 : index
    %c0_142 = arith.constant 0 : index
    %c0_143 = arith.constant 0 : index
    %363 = vector.load %arg17[%c0_141, %c0_142, %c0_143] : memref<1x1x1xf32, #tpu.memory_space<vmem>>, vector<1x1x1xf32>
    tpu.vector_store %arg17[%c0_141, %c0_142, %c0_143], %362 {strides = array<i32>} : memref<1x1x1xf32, #tpu.memory_space<vmem>>, vector<1x1x1xf32>,
    return
  }
  func.func @transform_0(%arg0: i32) -> (i32, i32, i32) {
    %c0_i32 = arith.constant 0 : i32
    %c0_i32_0 = arith.constant 0 : i32
    %c0_i32_1 = arith.constant 0 : i32
    return %arg0, %c0_i32, %c0_i32_0 : i32, i32, i32
  }
  func.func @transform_1(%arg0: i32) -> (i32, i32) {
    %c0_i32 = arith.constant 0 : i32
    %c0_i32_0 = arith.constant 0 : i32
    %c0_i32_1 = arith.constant 0 : i32
    return %c0_i32, %c0_i32_0 : i32, i32
  }
  func.func @transform_2(%arg0: i32) -> (i32, i32, i32) {
    %c0_i32 = arith.constant 0 : i32
    %c0_i32_0 = arith.constant 0 : i32
    %c0_i32_1 = arith.constant 0 : i32
    %c0_i32_2 = arith.constant 0 : i32
    return %c0_i32, %c0_i32_0, %c0_i32_1 : i32, i32, i32
  }
  func.func @transform_3(%arg0: i32) -> (i32, i32, i32) {
    %c0_i32 = arith.constant 0 : i32
    %c0_i32_0 = arith.constant 0 : i32
    %c0_i32_1 = arith.constant 0 : i32
    %c0_i32_2 = arith.constant 0 : i32
    return %c0_i32, %c0_i32_0, %c0_i32_1 : i32, i32, i32
  }
  func.func @transform_4(%arg0: i32) -> (i32, i32, i32) {
    %c0_i32 = arith.constant 0 : i32
    %c0_i32_0 = arith.constant 0 : i32
    %c0_i32_1 = arith.constant 0 : i32
    %c0_i32_2 = arith.constant 0 : i32
    return %c0_i32, %c0_i32_0, %c0_i32_1 : i32, i32, i32
  }
  func.func @transform_5(%arg0: i32) -> (i32, i32, i32) {
    %c0_i32 = arith.constant 0 : i32
    %c0_i32_0 = arith.constant 0 : i32
    %c0_i32_1 = arith.constant 0 : i32
    %c0_i32_2 = arith.constant 0 : i32
    return %c0_i32, %c0_i32_0, %c0_i32_1 : i32, i32, i32
  }
  func.func @transform_6(%arg0: i32) -> (i32, i32, i32) {
    %c0_i32 = arith.constant 0 : i32
    %c0_i32_0 = arith.constant 0 : i32
    %c0_i32_1 = arith.constant 0 : i32
    %c0_i32_2 = arith.constant 0 : i32
    return %c0_i32, %c0_i32_0, %c0_i32_1 : i32, i32, i32
  }
  func.func @transform_7(%arg0: i32) -> (i32, i32, i32) {
    %c0_i32 = arith.constant 0 : i32
    %c0_i32_0 = arith.constant 0 : i32
    %c0_i32_1 = arith.constant 0 : i32
    %c0_i32_2 = arith.constant 0 : i32
    return %c0_i32, %c0_i32_0, %c0_i32_1 : i32, i32, i32
  }
  func.func @transform_8(%arg0: i32) -> (i32, i32, i32) {
    %c0_i32 = arith.constant 0 : i32
    %c0_i32_0 = arith.constant 0 : i32
    %c0_i32_1 = arith.constant 0 : i32
    %c0_i32_2 = arith.constant 0 : i32
    return %c0_i32, %c0_i32_0, %c0_i32_1 : i32, i32, i32
  }
  func.func @transform_9(%arg0: i32) -> (i32, i32, i32) {
    %c0_i32 = arith.constant 0 : i32
    %c0_i32_0 = arith.constant 0 : i32
    %c0_i32_1 = arith.constant 0 : i32
    %c0_i32_2 = arith.constant 0 : i32
    return %c0_i32, %c0_i32_0, %c0_i32_1 : i32, i32, i32
  }
  func.func @transform_10(%arg0: i32) -> (i32, i32, i32) {
    %c0_i32 = arith.constant 0 : i32
    %c0_i32_0 = arith.constant 0 : i32
    %c0_i32_1 = arith.constant 0 : i32
    %c0_i32_2 = arith.constant 0 : i32
    return %c0_i32, %c0_i32_0, %c0_i32_1 : i32, i32, i32
  }
  func.func @transform_11(%arg0: i32) -> (i32, i32, i32) {
    %c0_i32 = arith.constant 0 : i32
    %c0_i32_0 = arith.constant 0 : i32
    %c0_i32_1 = arith.constant 0 : i32
    %c0_i32_2 = arith.constant 0 : i32
    return %c0_i32, %c0_i32_0, %c0_i32_1 : i32, i32, i32
  }
  func.func @transform_12(%arg0: i32) -> (i32, i32, i32) {
    %c0_i32 = arith.constant 0 : i32
    %c0_i32_0 = arith.constant 0 : i32
    %c0_i32_1 = arith.constant 0 : i32
    %c0_i32_2 = arith.constant 0 : i32
    return %c0_i32, %c0_i32_0, %c0_i32_1 : i32, i32, i32
  }
  func.func @transform_13(%arg0: i32) -> (i32, i32, i32) {
    %c0_i32 = arith.constant 0 : i32
    %c0_i32_0 = arith.constant 0 : i32
    %c0_i32_1 = arith.constant 0 : i32
    %c0_i32_2 = arith.constant 0 : i32
    return %c0_i32, %c0_i32_0, %c0_i32_1 : i32, i32, i32
  }
  func.func @transform_14(%arg0: i32) -> (i32, i32) {
    %c0_i32 = arith.constant 0 : i32
    %c0_i32_0 = arith.constant 0 : i32
    %c0_i32_1 = arith.constant 0 : i32
    return %c0_i32, %c0_i32_0 : i32, i32
  }
  func.func @transform_15(%arg0: i32) -> (i32, i32) {
    %c0_i32 = arith.constant 0 : i32
    %c0_i32_0 = arith.constant 0 : i32
    %c0_i32_1 = arith.constant 0 : i32
    return %c0_i32, %c0_i32_0 : i32, i32
  }
  func.func @transform_16(%arg0: i32) -> (i32, i32, i32) {
    %c0_i32 = arith.constant 0 : i32
    %c0_i32_0 = arith.constant 0 : i32
    %c0_i32_1 = arith.constant 0 : i32
    return %arg0, %c0_i32, %c0_i32_0 : i32, i32, i32
  }
}

</mosaic_0001>

<bundles_post_ra>
// kernel: tpu_custom_call.1
= control target key start
LH: loop header
LB: loop body
LE: loop exit
PB: predicated region body
PF: predicated region fallthrough
CT: control target
= control target key end

     0   :  { %s3220_s23 = smov 0   ;;  %s3713_s0 = inlined_call_operand.vmem [shape: f32[2,8,64], index: 0, kind: input, shape index: {}]   ;;  %s3714_s1 = inlined_call_operand.vmem [shape: f32[8,8], index: 1, kind: input, shape index: {}]   ;;  %s3715_s2 = inlined_call_operand.vmem [shape: bf16[2,64,192], index: 2, kind: input, shape index: {}]   ;;  %s3716_s3 = inlined_call_operand.vmem [shape: f32[2,1,192], index: 3, kind: input, shape index: {}]   ;;  %s3717_s4 = inlined_call_operand.vmem [shape: bf16[2,64,64], index: 4, kind: input, shape index: {}]   ;;  %s3718_s5 = inlined_call_operand.vmem [shape: f32[2,1,64], index: 5, kind: input, shape index: {}]   ;;  %s3719_s6 = inlined_call_operand.vmem [shape: f32[2,1,64], index: 6, kind: input, shape index: {}]   ;;  %s3720_s7 = inlined_call_operand.vmem [shape: f32[2,1,64], index: 7, kind: input, shape index: {}]   ;;  %s3721_s8 = inlined_call_operand.vmem [shape: f32[2,1,64], index: 8, kind: input, shape index: {}]   ;;  %s3722_s9 = inlined_call_operand.vmem [shape: f32[2,1,64], index: 9, kind: input, shape index: {}]   ;;  %s3723_s10 = inlined_call_operand.vmem [shape: bf16[2,64,256], index: 10, kind: input, shape index: {}]   ;;  %s3724_s11 = inlined_call_operand.vmem [shape: f32[2,1,256], index: 11, kind: input, shape index: {}]   ;;  %s3725_s12 = inlined_call_operand.vmem [shape: bf16[2,256,64], index: 12, kind: input, shape index: {}]   ;;  %s3726_s13 = inlined_call_operand.vmem [shape: f32[2,1,64], index: 13, kind: input, shape index: {}]   ;;  %s3727_s14 = inlined_call_operand.vmem [shape: f32[1,64], index: 14, kind: input, shape index: {}]   ;;  %s3728_s15 = inlined_call_operand.<no memory space> [shape: f32[1,1], index: 15, kind: input, shape index: {}]   ;;  %s3729_s16 = inlined_call_operand.vmem [shape: f32[2,1,1], index: 16, kind: output, shape index: {}]  }
   0x1   :  { %3736 = sst [smem:[#allocation3_spill]] %s3713_s0  ;;  %v21_v0 = vstv %s3728_s15 }
   0x2   :  { %22 = vst [vmem:[#allocation2] sm:$0x1] %v21_v0 }
   0x3 LB: > { %s2582_s24 = sadd.s32 4294967295, %s3120_s23   ;;  %p2586_p0 = scmp.ge.s32.totalorder %s3120_s23, 1  ;;  %s3120_s23 = sphi %s3220_s23, %s28_s23  }
   0x4   : > { %p463_p1 = scmp.lt.s32.totalorder %s3120_s23, 3 }
   0x6   : > { %p464_p2 = pnand %p2586_p0, %p463_p1 }
   0x7   : > { %p510_p3 = scmp.lt.s32.totalorder (!%p464_p2), %s2582_s24, 1  ;;  %s3737_s27 = sld [smem:[#allocation3_spill]] (!%p464_p2) }
   0x8   : > { %467 = sbr.rel (%p464_p2) target bundleno = 5011 (0x1393), region = 84  ;;  %s3125_s18 = smov (!%p464_p2), 112  }
   0x9   : > { %s3127_s20 = smov (!%p464_p2), 32   ;;  %s3128_s21 = smov (!%p464_p2), 48  }
   0xa   : > { %s3732_s22 = smov (!%p464_p2), 16   ;;  %s3734_s25 = smov (!%p464_p2), 96  }
   0xb   : > { %s3730_s26 = smov (!%p464_p2), 80   ;;  %s3740_s0 = smov (!%p464_p2), 80  }
   0xd   : > { %v2986_v1 = vld [vmem:[%s3715_s2 + $0x34] ss:$8 sps:$4 sm:$0xff]   ;;  %v2988_v2 = vld [vmem:[%s3715_s2 + $0x30] ss:$8 sps:$4 sm:$0xff]   ;;  %v3122_v3 = vmov 0   ;;  %s3742_s24 = smov (!%p510_p3, %s2582_s24), 1  ;;  %v531_v12 = vlaneseq }
   0xe   : > { %617 = vmatprep.mubr.bf16.mxu1 %v3122_v3  ;;  %593 = vmatprep.subr.bf16.mxu1 %v2986_v1  ;;  %v2989_v4 = vld [vmem:[%s3715_s2 + $0x24] ss:$8 sps:$4 sm:$0xff]   ;;  %v2991_v5 = vld [vmem:[%s3715_s2 + $0x20] ss:$8 sps:$4 sm:$0xff]   ;;  %v2992_v6 = vld [vmem:[%s3715_s2 + $0x14] ss:$8 sps:$4 sm:$0xff]  }
   0xf   : > { %594 = vmatpush1.bf16.msra.mxu1 %v2988_v2  ;;  %s2587_s19 = sshll.u32 %s3742_s24, 3  ;;  %v2994_v7 = vld [vmem:[%s3715_s2 + $0x10] ss:$8 sps:$4 sm:$0xff]   ;;  %v2995_v8 = vld [vmem:[%s3715_s2 + $0x4] ss:$8 sps:$4 sm:$0xff]   ;;  %vm581_vm0 = vcmask 523264  }
  0x10   : > { %595 = vmatprep.subr.bf16.mxu1 %v2989_v4  ;;  %s513_s28 = scalar_lea.vmem %s3737_s27, %s2587_s19  ;;  %v2997_v9 = vld [vmem:[%s3715_s2] ss:$8 sps:$4 sm:$0xff]   ;;  %v532_v13 = vshrl.u32 %v531_v12, 7  ;;  %v3123_v14 = vmov 0.0   ;;  %vm3124_vm1 = vmmov 0   ;;  %s3126_s19 = smov 64  }
  0x11   : > { %v3259_v10 = vld [vmem:[%s513_s28] sm:$0xff]  ;;  %2860 = vmatprep.subr.bf16.mxu0 %v3123_v14  ;;  %2862 = vmatprep.mubr.msk.bf16.mxu0 %vm3124_vm1, %v3123_v14  ;;  %vm631_vm2 = vcmask 130048   ;;  %vm694_vm3 = vcmask 1043456   ;;  %vm678_vm4 = vcmask 64512   ;;  %vm1082_vm5 = vcmask 261120   ;;  %s516_s27 = scalar_lea.vmem %s3729_s16, %s3742_s24 }
  0x12   : > { %v520_v11 = vpack.c.bf16 %v3259_v10, %v3259_v10  ;;  %v3266_v15 = vsub.s32 0, %v532_v13  ;;  %v529_v16 = vld [vmem:[%s3716_s3] sm:$0x3]  ;;  %v3283_v24 = vsub.s32 1, %v532_v13  ;;  %vm1084_vm6 = vcmask 392192  }
  0x13   : > { %596 = vmatpush1.bf16.msra.mxu1 %v2991_v5  ;;  %v3314_v40 = vld [vmem:[%s3714_s1] sm:$0xff]  ;;  %vm2521_vm7 = vcmask 523271   ;;  %vm2533_vm8 = vcmask 7175  }
  0x14   : > { %597 = vmatprep.subr.bf16.mxu1 %v2992_v6  ;;  %v534_v17 = vrot.slane %v529_v16, %v3266_v15  ;;  %v538_v25 = vrot.slane %v529_v16, %v3283_v24 }
  0x17   : > { %598 = vmatpush1.bf16.msra.mxu1 %v2994_v7 }
  0x18   : > { %599 = vmatprep.subr.bf16.mxu1 %v2995_v8 }
  0x1b   : > { %600 = vmatpush1.bf16.msra.mxu1 %v2997_v9 }
  0x1c   : > { %2848 = vmatprep.subr.bf16.mxu1 %v3123_v14 }
  0x1e   : > { %2596 = vmatmul.mubr.msk.bf16.vlgmr.msra.gmra.mxu1 %vm581_vm0, %v520_v11 }
  0x1f   : > { %2850 = vmatprep.mubr.msk.bf16.mxu1 %vm3124_vm1, %v3123_v14 }
  0xde   : > { %v619_v18 = vpop.f32.mrf.mxu1 }
  0xdf   : > { %v620_v19 = vadd.f32 %v619_v18, %v534_v17 }
  0xe0   : > { %v621_v20 = vpop.f32.mrf.mxu1 }
  0xe1   : > { %v626_v21 = vpack.c.bf16 %v620_v19, %v620_v19  ;;  %v622_v27 = vadd.f32 %v621_v20, %v538_v25 }
  0xe2   : > { %v623_v22 = vpop.f32.mrf.mxu1 }
  0xe3   : > { %738 = vrot.lane.b32.xlu1 %v626_v21, %s3125_s18  ;;  %629 = vrot.lane.b32.xlu0 %v626_v21, %s3126_s19  ;;  %v3288_v31 = vpack.c.bf16 %v622_v27, %v622_v27 }
  0xe4   : > { %v624_v23 = vpop.f32.mrf.mxu1 }
  0xe5   : > { %v696_v33 = vsel %vm694_vm3, %v3288_v31, 0 }
  0xe7   : > { %851 = vrot.lane.b32.xlu1 %v626_v21, %s3127_s20  ;;  %740 = vrot.lane.b32.xlu0 %v626_v21, %s3128_s21 }
  0xeb   : > { %961 = vrot.lane.b32.xlu1 %v626_v21, %s3732_s22  ;;  %849 = vrot.lane.b32.xlu0 %v626_v21, %s3734_s25 }
  0xef   : > { %959 = vrot.lane.b32.xlu0 %v626_v21, %s3730_s26 }
 0x155   : > { %v630_v26 = vpop.permute.xlu0 %629  ;;  %v739_v29 = vpop.permute.xlu1 %738 }
 0x156   : > { %v636_v28 = vsel %vm631_vm2, %v630_v26, 0 }
 0x157   : > { %2849 = vmatpush3.bf16.xpose.msra.mxu1 %v636_v28 }
 0x158   : > { %2854 = vmatprep.subr.bf16.mxu1 %v3123_v14 }
 0x159   : > { %v741_v30 = vpop.permute.xlu0 %740  ;;  %v852_v34 = vpop.permute.xlu1 %851 }
 0x15a   : > { %v746_v32 = vsel %vm631_vm2, %v741_v30, 0  ;;  %v857_v35 = vsel %vm631_vm2, %v852_v34, 0 }
 0x15b   : > { %2861 = vmatpush3.bf16.xpose.msra.mxu0 %v746_v32 }
 0x15c   : > { %2872 = vmatprep.subr.bf16.mxu0 %v3123_v14 }
 0x15d   : > { %v962_v36 = vpop.permute.xlu1 %961  ;;  %v850_v37 = vpop.permute.xlu0 %849 }
 0x15e   : > { %2851 = vmatmul.mubr.msk.bf16.vlgmr.msra.gmra.mxu1 %vm631_vm2, %v626_v21  ;;  %v967_v38 = vsel %vm631_vm2, %v962_v36, 0 }
 0x15f   : > { %2855 = vmatpush3.bf16.msra.mxu1 %v696_v33  ;;  %2856 = vmatprep.mubr.msk.bf16.mxu1 %vm3124_vm1, %v3123_v14 }
 0x160   : > { %2866 = vmatprep.subr.bf16.mxu1 %v3123_v14 }
 0x161   : > { %v960_v39 = vpop.permute.xlu0 %959 }
 0x162   : > { %2863 = vmatmul.mubr.msk.bf16.vlgmr.msra.gmra.mxu0 %vm631_vm2, %v739_v29 }
 0x163   : > { %2873 = vmatpush3.bf16.xpose.msra.mxu0 %v857_v35  ;;  %2874 = vmatprep.mubr.msk.bf16.mxu0 %vm3124_vm1, %v3123_v14 }
 0x164   : > { %2884 = vmatprep.subr.bf16.mxu0 %v3123_v14 }
 0x16a   : > { %2875 = vmatmul.mubr.msk.bf16.vlgmr.msra.gmra.mxu0 %vm631_vm2, %v850_v37 }
 0x16b   : > { %2885 = vmatpush3.bf16.xpose.msra.mxu0 %v967_v38  ;;  %2886 = vmatprep.mubr.msk.bf16.mxu0 %vm3124_vm1, %v3123_v14 }
 0x16c   : > { %2896 = vmatprep.subr.bf16.mxu0 %v3123_v14 }
 0x172   : > { %2887 = vmatmul.mubr.msk.bf16.vlgmr.msra.gmra.mxu0 %vm631_vm2, %v960_v39 }
 0x173   : > { %2904 = vmatprep.mubr.msk.bf16.mxu0 %vm3124_vm1, %v3123_v14 }
 0x21e   : > { %v672_v41 = vpop.f32.mrf.mxu1 }
 0x21f   : > { %v673_v42 = vadd.f32 %v672_v41, %v3314_v40 }
 0x220   : > { %v2852_v43 = vpop.f32.mrf.mxu1 }
 0x221   : > { %v679_v44 = vsel %vm678_vm4, %v673_v42, -inf }
 0x222   : > { %680 = vmax.xlane.f32.xlu1 %v679_v44  ;;  %v675_v45 = vpop.f32.mrf.mxu1  ;;  %v782_v46 = vpop.f32.mrf.mxu0 }
 0x223   : > { %v783_v47 = vadd.f32 %v782_v46, %v3314_v40 }
 0x224   : > { %v2853_v48 = vpop.f32.mrf.mxu1  ;;  %v2864_v49 = vpop.f32.mrf.mxu0 }
 0x225   : > { %v788_v50 = vsel %vm678_vm4, %v783_v47, -inf }
 0x226   : > { %789 = vmax.xlane.f32.xlu0 %v788_v50  ;;  %v785_v51 = vpop.f32.mrf.mxu0 }
 0x228   : > { %v2865_v52 = vpop.f32.mrf.mxu0 }
 0x229   : > { %v2998_v52 = vld [vmem:[%s3717_s4 + $0x18] sm:$0xff]  }
 0x22a   : > { %v893_v53 = vpop.f32.mrf.mxu0  ;;  %2897 = vmatpush3.bf16.msra.mxu0 %v2998_v52 }
 0x22b   : > { %v894_v54 = vadd.f32 %v893_v53, %v3314_v40  ;;  %2898 = vmatprep.subr.bf16.mxu0 %v3123_v14 }
 0x22c   : > { %v2876_v55 = vpop.f32.mrf.mxu0 }
 0x22d   : > { %v899_v56 = vsel %vm678_vm4, %v894_v54, -inf }
 0x22e   : > { %900 = vmax.xlane.f32.xlu0 %v899_v56  ;;  %v896_v57 = vpop.f32.mrf.mxu0 }
 0x22f   : > { %v3000_v57 = vld [vmem:[%s3717_s4 + $0x8] sm:$0xff]  }
 0x230   : > { %v2877_v58 = vpop.f32.mrf.mxu0 }
 0x232   : > { %v1003_v59 = vpop.f32.mrf.mxu0 }
 0x233   : > { %v1004_v60 = vadd.f32 %v1003_v59, %v3314_v40 }
 0x234   : > { %v2888_v61 = vpop.f32.mrf.mxu0 }
 0x235   : > { %v1009_v62 = vsel %vm678_vm4, %v1004_v60, -inf }
 0x236   : > { %1010 = vmax.xlane.f32.xlu1 %v1009_v62  ;;  %v1006_v63 = vpop.f32.mrf.mxu0 }
 0x238   : > { %v2889_v0 = vpop.f32.mrf.mxu0 }
 0x239   : > { %v3001_v0 = vld [vmem:[%s3717_s4] sm:$0xff]  }
 0x2ab   : > { %v681_v1 = vpop.xlane.xlu1 %680 }
 0x2ac   : > { %v682_v2 = vsub.f32 %v673_v42, %v681_v1 }
 0x2ae   : > { %v683_v4 = vmul.f32 1.442695, %v682_v2 }
 0x2af   : > { %v790_v5 = vpop.xlane.xlu0 %789 }
 0x2b0   : > { %3074 = vpow2.f32 %v683_v4  ;;  %v791_v6 = vsub.f32 %v783_v47, %v790_v5 }
 0x2b2   : > { %v792_v7 = vmul.f32 1.442695, %v791_v6 }
 0x2b4   : > { %3076 = vpow2.f32 %v792_v7 }
 0x2b7   : > { %v901_v8 = vpop.xlane.xlu0 %900 }
 0x2b8   : > { %v902_v9 = vsub.f32 %v894_v54, %v901_v8  ;;  %v2999_v54 = vld [vmem:[%s3717_s4 + $0x10] sm:$0xff]  }
 0x2b9   : > { %2899 = vmatpush3.bf16.msra.mxu0 %v2999_v54  ;;  %v2611_v54 = vld [vmem:[%s3719_s6] ss:$0 sm:$0xff] }
 0x2ba   : > { %v903_v11 = vmul.f32 1.442695, %v902_v9  ;;  %2900 = vmatprep.subr.bf16.mxu0 %v3123_v14 }
 0x2bc   : > { %3078 = vpow2.f32 %v903_v11 }
 0x2bd   : > { %v3075_v12 = vpop.eup %3074  ;;  %2901 = vmatpush3.bf16.msra.mxu0 %v3000_v57 }
 0x2be   : > { %v685_v13 = vsel %vm678_vm4, %v3075_v12, 0.0  ;;  %2902 = vmatprep.subr.bf16.mxu0 %v3123_v14 }
 0x2bf   : > { %686 = vadd.xlane.f32.xlu0 %v685_v13  ;;  %v1011_v20 = vpop.xlane.xlu1 %1010 }
 0x2c0   : > { %v1012_v21 = vsub.f32 %v1004_v60, %v1011_v20 }
 0x2c1   : > { %v3077_v16 = vpop.eup %3076  ;;  %2903 = vmatpush3.bf16.msra.mxu0 %v3001_v0  ;;  %v1209_v0 = vld [vmem:[%s3724_s11] sm:$0x3] }
 0x2c2   : > { %v794_v17 = vsel %vm678_vm4, %v3077_v16, 0.0  ;;  %v1013_v22 = vmul.f32 1.442695, %v1012_v21 }
 0x2c3   : > { %795 = vadd.xlane.f32.xlu1 %v794_v17 }
 0x2c4   : > { %3080 = vpow2.f32 %v1013_v22 }
 0x2c9   : > { %v3079_v18 = vpop.eup %3078 }
 0x2ca   : > { %v905_v19 = vsel %vm678_vm4, %v3079_v18, 0.0 }
 0x2cb   : > { %906 = vadd.xlane.f32.xlu0 %v905_v19 }
 0x2d1   : > { %v3081_v23 = vpop.eup %3080 }
 0x2d2   : > { %v1015_v25 = vsel %vm678_vm4, %v3081_v23, 0.0 }
 0x2d4   : > { %911 = vrot.lane.b32.xlu1 %v3288_v31, %s3734_s25  ;;  %s3739_s25 = smov 16  }
 0x2e1   : > { %801 = vrot.lane.b32.xlu0 %v3288_v31, %s3125_s18 }
 0x2f8   : > { %1016 = vadd.xlane.f32.xlu1 %v1015_v25 }
 0x309   : > { %1021 = vrot.lane.b32.xlu1 %v3288_v31, %s3730_s26 }
 0x348   : > { %v687_v26 = vpop.xlane.xlu0 %686 }
 0x349   : > { %3082 = vrcp.f32 %v687_v26 }
 0x34c   : > { %v796_v27 = vpop.xlane.xlu1 %795 }
 0x34d   : > { %3084 = vrcp.f32 %v796_v27 }
 0x350   : > { %v912_v36 = vpop.permute.xlu1 %911 }
 0x351   : > { %v917_v39 = vsel %vm694_vm3, %v912_v36, 0  ;;  %v3011_v36 = vld [vmem:[%s3723_s10] ss:$8 sps:$4 sm:$0xff]  }
 0x354   : > { %v907_v28 = vpop.xlane.xlu0 %906 }
 0x355   : > { %3086 = vrcp.f32 %v907_v28 }
 0x356   : > { %v3083_v29 = vpop.eup %3082 }
 0x357   : > { %v689_v30 = vmul.f32 %v3083_v29, %v3075_v12 }
 0x358   : > { %v802_v32 = vpop.permute.xlu0 %801 }
 0x359   : > { %v807_v33 = vsel %vm694_vm3, %v802_v32, 0  ;;  %v690_v34 = vpack.c.bf16 %v689_v30, %v689_v30  ;;  %v3004_v30 = vld [vmem:[%s3723_s10 + $0x34] ss:$8 sps:$4 sm:$0xff]   ;;  %v3007_v32 = vld [vmem:[%s3723_s10 + $0x24] ss:$8 sps:$4 sm:$0xff]  }
 0x35a   : > { %v3085_v35 = vpop.eup %3084 }
 0x35b   : > { %2857 = vmatmul.mubr.msk.bf16.vlgmr.msra.gmra.mxu1 %vm678_vm4, %v690_v34  ;;  %v798_v31 = vmul.f32 %v3085_v35, %v3077_v16  ;;  %v2605_v16 = vld [vmem:[%s3718_s5] ss:$0 sm:$0xff]  ;;  %v3010_v34 = vld [vmem:[%s3723_s10 + $0x14] ss:$8 sps:$4 sm:$0xff]   ;;  %v3008_v35 = vld [vmem:[%s3723_s10 + $0x10] ss:$8 sps:$4 sm:$0xff]  }
 0x35c   : > { %2867 = vmatpush3.bf16.msra.mxu1 %v807_v33  ;;  %2868 = vmatprep.mubr.msk.bf16.mxu1 %vm3124_vm1, %v3123_v14  ;;  %v3005_v33 = vld [vmem:[%s3723_s10 + $0x20] ss:$8 sps:$4 sm:$0xff]  }
 0x35d   : > { %2878 = vmatprep.subr.bf16.mxu1 %v3123_v14  ;;  %v799_v37 = vpack.c.bf16 %v798_v31, %v798_v31  ;;  %v3013_v31 = vld [vmem:[%s3723_s10 + $0x4] ss:$8 sps:$4 sm:$0xff]  }
 0x362   : > { %v3087_v38 = vpop.eup %3086 }
 0x363   : > { %2869 = vmatmul.mubr.msk.bf16.vlgmr.msra.gmra.mxu1 %vm678_vm4, %v799_v37  ;;  %v909_v41 = vmul.f32 %v3087_v38, %v3079_v18  ;;  %v3014_v37 = vld [vmem:[%s3725_s12 + $0x78] sm:$0xff]  }
 0x364   : > { %2879 = vmatpush3.bf16.msra.mxu1 %v917_v39  ;;  %2880 = vmatprep.mubr.msk.bf16.mxu1 %vm3124_vm1, %v3123_v14  ;;  %v3015_v38 = vld [vmem:[%s3725_s12 + $0x38] sm:$0xff]   ;;  %v3016_v39 = vld [vmem:[%s3725_s12 + $0x70] sm:$0xff]  }
 0x365   : > { %2890 = vmatprep.subr.bf16.mxu1 %v3123_v14  ;;  %v910_v42 = vpack.c.bf16 %v909_v41, %v909_v41  ;;  %2783 = vmatprep.subr.bf16.mxu0 %v3014_v37  ;;  %v3017_v41 = vld [vmem:[%s3725_s12 + $0x30] sm:$0xff]   ;;  %v3041_v37 = vld [vmem:[%s3715_s2 + $0x44] ss:$8 sps:$4 sm:$0xff]  }
 0x36b   : > { %2881 = vmatmul.mubr.msk.bf16.vlgmr.msra.gmra.mxu1 %vm678_vm4, %v910_v42  ;;  %v3018_v42 = vld [vmem:[%s3725_s12 + $0x68] sm:$0xff]  }
 0x36c   : > { %2892 = vmatprep.mubr.msk.bf16.mxu1 %vm3124_vm1, %v3123_v14 }
 0x381   : > { %v1017_v43 = vpop.xlane.xlu1 %1016 }
 0x382   : > { %3088 = vrcp.f32 %v1017_v43  ;;  %v3019_v43 = vld [vmem:[%s3725_s12 + $0x28] sm:$0xff]  }
 0x385   : > { %v1022_v44 = vpop.permute.xlu1 %1021 }
 0x386   : > { %v1027_v45 = vsel %vm694_vm3, %v1022_v44, 0  ;;  %v3020_v44 = vld [vmem:[%s3725_s12 + $0x60] sm:$0xff]  }
 0x387   : > { %2891 = vmatpush3.bf16.msra.mxu1 %v1027_v45  ;;  %v3021_v45 = vld [vmem:[%s3725_s12 + $0x20] sm:$0xff]  }
 0x388   : > { %1272 = vmatprep.subr.bf16.mxu1 %v3004_v30 }
 0x38f   : > { %v3089_v46 = vpop.eup %3088 }
 0x390   : > { %v1019_v47 = vmul.f32 %v3089_v46, %v3081_v23  ;;  %v3022_v46 = vld [vmem:[%s3725_s12 + $0x58] sm:$0xff]  }
 0x392   : > { %v1020_v48 = vpack.c.bf16 %v1019_v47, %v1019_v47  ;;  %v3023_v47 = vld [vmem:[%s3725_s12 + $0x18] sm:$0xff]  }
 0x394   : > { %2893 = vmatmul.mubr.msk.bf16.vlgmr.msra.gmra.mxu1 %vm678_vm4, %v1020_v48  ;;  %v3024_v48 = vld [vmem:[%s3725_s12 + $0x50] sm:$0xff]  }
 0x395   : > { %1296 = vmatprep.mubr.bf16.mxu1 %v3122_v3 }
 0x41b   : > { %v732_v49 = vpop.f32.mrf.mxu1 }
 0x41d   : > { %v2858_v50 = vpop.f32.mrf.mxu1 }
 0x41f   : > { %v735_v51 = vpop.f32.mrf.mxu1 }
 0x421   : > { %v2859_v53 = vpop.f32.mrf.mxu1 }
 0x423   : > { %v843_v55 = vpop.f32.mrf.mxu1 }
 0x424   : > { %1070 = vrot.lane.b32.xlu0 %v843_v55, %s3732_s22  ;;  %s3738_s22 = smov 96  }
 0x425   : > { %v2870_v56 = vpop.f32.mrf.mxu1 }
 0x426   : > { %v2612_v56 = vld [vmem:[%s3720_s7] ss:$0 sm:$0xff] }
 0x427   : > { %v846_v58 = vpop.f32.mrf.mxu1 }
 0x429   : > { %v2871_v59 = vpop.f32.mrf.mxu1 }
 0x42b   : > { %v953_v60 = vpop.f32.mrf.mxu1 }
 0x42c   : > { %1074 = vrot.lane.b32.xlu1 %v953_v60, %s3127_s20  ;;  %v3026_v60 = vld [vmem:[%s3725_s12 + $0x48] sm:$0xff]  }
 0x42d   : > { %v2882_v61 = vpop.f32.mrf.mxu1 }
 0x42e   : > { %v3027_v61 = vld [vmem:[%s3725_s12 + $0x8] sm:$0xff]  }
 0x42f   : > { %v956_v62 = vpop.f32.mrf.mxu1 }
 0x430   : > { %v3028_v62 = vld [vmem:[%s3725_s12 + $0x40] sm:$0xff]  }
 0x431   : > { %v2883_v63 = vpop.f32.mrf.mxu1 }
 0x432   : > { %v3029_v63 = vld [vmem:[%s3725_s12] sm:$0xff]  }
 0x454   : > { %v1063_v1 = vpop.f32.mrf.mxu1 }
 0x455   : > { %1078 = vrot.lane.b32.xlu0 %v1063_v1, %s3128_s21  ;;  %v1214_v1 = vrot.slane %v1209_v0, %v3266_v15 }
 0x456   : > { %v2894_v2 = vpop.f32.mrf.mxu1 }
 0x457   : > { %v1218_v2 = vrot.slane %v1209_v0, %v3283_v24 }
 0x458   : > { %v1066_v4 = vpop.f32.mrf.mxu1 }
 0x45a   : > { %v2895_v5 = vpop.f32.mrf.mxu1 }
 0x496   : > { %v1071_v6 = vpop.permute.xlu0 %1070 }
 0x497   : > { %v1081_v8 = vsel %vm631_vm2, %v732_v49, %v1071_v6  ;;  %v3025_v49 = vld [vmem:[%s3725_s12 + $0x10] sm:$0xff]  }
 0x49e   : > { %v1075_v7 = vpop.permute.xlu1 %1074 }
 0x49f   : > { %v1083_v9 = vsel %vm1082_vm5, %v1081_v8, %v1075_v7 }
 0x4c7   : > { %v1079_v11 = vpop.permute.xlu0 %1078 }
 0x4c8   : > { %v1085_v12 = vsel %vm1084_vm6, %v1083_v9, %v1079_v11 }
 0x4c9   : > { %v1086_v13 = vpack.c.bf16 %v1085_v12, %v1085_v12 }
 0x4cb   : > { %2905 = vmatmul.mubr.msk.bf16.vlgmr.msra.gmra.mxu0 %vm581_vm0, %v1086_v13 }
 0x4cc   : > { %2784 = vmatpush3.bf16.msra.mxu0 %v3015_v38  ;;  %v3039_v38 = vld [vmem:[%s3715_s2 + $0x40] ss:$8 sps:$4 sm:$0xff]  }
 0x4cd   : > { %2785 = vmatprep.subr.bf16.mxu0 %v3016_v39 }
 0x4d0   : > { %2786 = vmatpush3.bf16.msra.mxu0 %v3017_v41 }
 0x4d1   : > { %2787 = vmatprep.subr.bf16.mxu0 %v3018_v42 }
 0x4d4   : > { %2788 = vmatpush3.bf16.msra.mxu0 %v3019_v43 }
 0x4d5   : > { %2789 = vmatprep.subr.bf16.mxu0 %v3020_v44  ;;  %v2639_v44 = vld [vmem:[%s3721_s8] ss:$0 sm:$0xff] }
 0x4d8   : > { %2790 = vmatpush3.bf16.msra.mxu0 %v3021_v45 }
 0x4d9   : > { %2791 = vmatprep.subr.bf16.mxu0 %v3022_v46  ;;  %v2640_v46 = vld [vmem:[%s3722_s9] ss:$0 sm:$0xff] }
 0x4dc   : > { %2792 = vmatpush3.bf16.msra.mxu0 %v3023_v47 }
 0x4dd   : > { %2793 = vmatprep.subr.bf16.mxu0 %v3024_v48 }
 0x4e0   : > { %2794 = vmatpush3.bf16.msra.mxu0 %v3025_v49 }
 0x4e1   : > { %2795 = vmatprep.subr.bf16.mxu0 %v3026_v60 }
 0x4e4   : > { %2796 = vmatpush3.bf16.msra.mxu0 %v3027_v61 }
 0x4e5   : > { %2797 = vmatprep.subr.bf16.mxu0 %v3028_v62 }
 0x4e8   : > { %2798 = vmatpush3.bf16.msra.mxu0 %v3029_v63 }
 0x4e9   : > { %2920 = vmatprep.subr.bf16.mxu0 %v3123_v14 }
 0x58b   : > { %v1163_v17 = vpop.f32.mrf.mxu0 }
 0x58c   : > { %v1164_v18 = vadd.f32 %v2605_v16, %v1163_v17 }
 0x58d   : > { %v2906_v19 = vpop.f32.mrf.mxu0 }
 0x58e   : > { %v1169_v20 = vadd.f32 %v1164_v18, %v3259_v10  ;;  %v3002_v10 = vld [vmem:[%s3723_s10 + $0x30] ss:$8 sps:$4 sm:$0xff]   ;;  %v2622_v18 = vld [vmem:[%s3726_s13] ss:$0 sm:$0xff] }
 0x58f   : > { %v1166_v21 = vpop.f32.mrf.mxu0  ;;  %1273 = vmatpush1.bf16.msra.mxu1 %v3002_v10 }
 0x590   : > { %v1172_v22 = vsel %vm581_vm0, %v1169_v20, 0.0  ;;  %1274 = vmatprep.subr.bf16.mxu1 %v3007_v32  ;;  %v3032_v32 = vld [vmem:[%s3715_s2 + $0x74] ss:$8 sps:$4 sm:$0xff]  }
 0x591   : > { %1173 = vadd.xlane.f32.xlu1 %v1172_v22  ;;  %v2907_v23 = vpop.f32.mrf.mxu0 }
 0x593   : > { %1275 = vmatpush1.bf16.msra.mxu1 %v3005_v33  ;;  %v3030_v33 = vld [vmem:[%s3715_s2 + $0x70] ss:$8 sps:$4 sm:$0xff]  }
 0x594   : > { %1276 = vmatprep.subr.bf16.mxu1 %v3010_v34  ;;  %v3035_v34 = vld [vmem:[%s3715_s2 + $0x64] ss:$8 sps:$4 sm:$0xff]  }
 0x597   : > { %1277 = vmatpush1.bf16.msra.mxu1 %v3008_v35  ;;  %v3033_v35 = vld [vmem:[%s3715_s2 + $0x60] ss:$8 sps:$4 sm:$0xff]  }
 0x598   : > { %1278 = vmatprep.subr.bf16.mxu1 %v3013_v31  ;;  %v3038_v31 = vld [vmem:[%s3715_s2 + $0x54] ss:$8 sps:$4 sm:$0xff]  }
 0x59b   : > { %1279 = vmatpush1.bf16.msra.mxu1 %v3011_v36  ;;  %v3036_v36 = vld [vmem:[%s3715_s2 + $0x50] ss:$8 sps:$4 sm:$0xff]  }
 0x59c   : > { %1588 = vmatprep.subr.bf16.mxu1 %v3032_v32 }
 0x61a   : > { %v1174_v25 = vpop.xlane.xlu1 %1173 }
 0x61b   : > { %v1176_v26 = vmul.f32 0.015625, %v1174_v25 }
 0x61d   : > { %v1177_v27 = vsub.f32 %v1169_v20, %v1176_v26 }
 0x61f   : > { %v1178_v28 = vmul.f32 %v1177_v27, %v1177_v27 }
 0x621   : > { %v1179_v29 = vsel %vm581_vm0, %v1178_v28, 0.0 }
 0x622   : > { %1180 = vadd.xlane.f32.xlu0 %v1179_v29 }
 0x6ab   : > { %v1181_v50 = vpop.xlane.xlu0 %1180 }
 0x6ac   : > { %v1182_v51 = vmul.f32 0.015625, %v1181_v50  ;;  %v2649_v50 = vld [vmem:[%s3716_s3 + $0x2] sm:$0x3] }
 0x6ae   : > { %v1183_v52 = vadd.f32 1e-05, %v1182_v51  ;;  %v1530_v51 = vrot.slane %v2649_v50, %v3266_v15 }
 0x6b0   : > { %3090 = vrsqrt.f32 %v1183_v52 }
 0x6bd   : > { %v3091_v53 = vpop.eup %3090 }
 0x6be   : > { %v1185_v55 = vmul.f32 %v3091_v53, %v1177_v27 }
 0x6c0   : > { %v1192_v57 = vmul.f32 %v2611_v54, %v1185_v55 }
 0x6c2   : > { %v1199_v58 = vadd.f32 %v2612_v56, %v1192_v57 }
 0x6c4   : > { %v1200_v59 = vpack.c.bf16 %v1199_v58, %v1199_v58 }
 0x6c6   : > { %2621 = vmatmul.mubr.msk.bf16.vlgmr.msra.gmra.mxu1 %vm581_vm0, %v1200_v59 }
 0x6c7   : > { %1612 = vmatprep.mubr.bf16.mxu1 %v3122_v3  ;;  %1589 = vmatpush1.bf16.msra.mxu1 %v3030_v33 }
 0x6c8   : > { %1590 = vmatprep.subr.bf16.mxu1 %v3035_v34 }
 0x6cb   : > { %1591 = vmatpush1.bf16.msra.mxu1 %v3033_v35 }
 0x6cc   : > { %1592 = vmatprep.subr.bf16.mxu1 %v3038_v31 }
 0x6cf   : > { %1593 = vmatpush1.bf16.msra.mxu1 %v3036_v36 }
 0x6d0   : > { %1594 = vmatprep.subr.bf16.mxu1 %v3041_v37 }
 0x6d3   : > { %1595 = vmatpush1.bf16.msra.mxu1 %v3039_v38 }
 0x6d4   : > { %2908 = vmatprep.subr.bf16.mxu1 %v3123_v14 }
 0x786   : > { %v1298_v4 = vpop.f32.mrf.mxu1 }
 0x787   : > { %v1299_v5 = vadd.f32 %v1298_v4, %v1214_v1 }
 0x788   : > { %v1300_v6 = vpop.f32.mrf.mxu1 }
 0x789   : > { %v1301_v7 = vadd.f32 %v1300_v6, %v1218_v2  ;;  %v1305_v8 = vmax.f32 %v1299_v5, 0.0 }
 0x78a   : > { %v1302_v9 = vpop.f32.mrf.mxu1 }
 0x78b   : > { %v1306_v11 = vmax.f32 %v1301_v7, 0.0  ;;  %v1307_v16 = vpack.c.bf16 %v1305_v8, %v1305_v8 }
 0x78c   : > { %v1303_v12 = vpop.f32.mrf.mxu1 }
 0x78d   : > { %v1308_v13 = vpack.c.bf16 %v1306_v11, %v1306_v11 }
 0x78f   : > { %1476 = vmatprep.mubr.bf16.mxu0 %v1308_v13 }
 0x790   : > { %1477 = vmatmul.mubr.bf16.vlgmr.msra.gmra.mxu0 %v1307_v16 }
 0x791   : > { %2922 = vmatprep.mubr.msk.bf16.mxu0 %vm3124_vm1, %v3123_v14 }
 0x850   : > { %v2799_v17 = vpop.f32.mrf.mxu0 }
 0x852   : > { %v2800_v19 = vpop.f32.mrf.mxu0 }
 0x853   : > { %v2801_v20 = vadd.f32 %v2800_v19, %v2799_v17 }
 0x854   : > { %v2802_v21 = vpop.f32.mrf.mxu0 }
 0x855   : > { %v1479_v22 = vadd.f32 %v2801_v20, %v2622_v18 }
 0x856   : > { %v2803_v23 = vpop.f32.mrf.mxu0 }
 0x857   : > { %v1484_v25 = vadd.f32 %v1479_v22, %v1199_v58  ;;  %v1534_v58 = vrot.slane %v2649_v50, %v3283_v24 }
 0x859   : > { %v1487_v26 = vsel %vm581_vm0, %v1484_v25, 0.0 }
 0x85a   : > { %1488 = vadd.xlane.f32.xlu0 %v1487_v26 }
 0x8e3   : > { %v1489_v27 = vpop.xlane.xlu0 %1488 }
 0x8e4   : > { %v1490_v28 = vmul.f32 0.015625, %v1489_v27 }
 0x8e6   : > { %v1491_v29 = vsub.f32 %v1484_v25, %v1490_v28 }
 0x8e8   : > { %v1492_v30 = vmul.f32 %v1491_v29, %v1491_v29 }
 0x8ea   : > { %v1493_v10 = vsel %vm581_vm0, %v1492_v30, 0.0 }
 0x8eb   : > { %1494 = vadd.xlane.f32.xlu1 %v1493_v10 }
 0x974   : > { %v1495_v39 = vpop.xlane.xlu1 %1494 }
 0x975   : > { %v1496_v41 = vmul.f32 0.015625, %v1495_v39 }
 0x977   : > { %v1497_v42 = vadd.f32 1e-05, %v1496_v41 }
 0x979   : > { %3092 = vrsqrt.f32 %v1497_v42 }
 0x986   : > { %v3093_v43 = vpop.eup %3092 }
 0x987   : > { %v1499_v45 = vmul.f32 %v3093_v43, %v1491_v29 }
 0x989   : > { %v1506_v47 = vmul.f32 %v2639_v44, %v1499_v45 }
 0x98b   : > { %v3502_v48 = vadd.f32 %v2640_v46, %v1506_v47 }
 0x98d   : > { %v1514_v49 = vpack.c.bf16 %v3502_v48, %v3502_v48 }
 0x98f   : > { %2658 = vmatmul.mubr.msk.bf16.vlgmr.msra.gmra.mxu1 %vm581_vm0, %v1514_v49 }
 0x990   : > { %2910 = vmatprep.mubr.msk.bf16.mxu1 %vm3124_vm1, %v3123_v14 }
 0xa4f   : > { %v1614_v52 = vpop.f32.mrf.mxu1 }
 0xa50   : > { %v1615_v53 = vadd.f32 %v1614_v52, %v1530_v51 }
 0xa51   : > { %v1616_v54 = vpop.f32.mrf.mxu1 }
 0xa52   : > { %v1621_v55 = vpack.c.bf16 %v1615_v53, %v1615_v53  ;;  %v1617_v61 = vadd.f32 %v1616_v54, %v1534_v58 }
 0xa53   : > { %v1618_v56 = vpop.f32.mrf.mxu1 }
 0xa54   : > { %1732 = vrot.lane.b32.xlu1 %v1621_v55, %s3128_s21  ;;  %1624 = vrot.lane.b32.xlu0 %v1621_v55, %s3126_s19  ;;  %v3525_v0 = vpack.c.bf16 %v1617_v61, %v1617_v61 }
 0xa55   : > { %v1619_v57 = vpop.f32.mrf.mxu1 }
 0xa56   : > { %v1688_v5 = vsel %vm694_vm3, %v3525_v0, 0 }
 0xa58   : > { %1730 = vrot.lane.b32.xlu1 %v1621_v55, %s3125_s18  ;;  %1843 = vrot.lane.b32.xlu0 %v1621_v55, %s3127_s20 }
 0xa5c   : > { %1841 = vrot.lane.b32.xlu1 %v1621_v55, %s3738_s22  ;;  %1953 = vrot.lane.b32.xlu0 %v1621_v55, %s3739_s25 }
 0xa60   : > { %1951 = vrot.lane.b32.xlu1 %v1621_v55, %s3740_s0 }
 0xac6   : > { %v1733_v59 = vpop.permute.xlu1 %1732  ;;  %v1625_v60 = vpop.permute.xlu0 %1624 }
 0xac7   : > { %v1738_v62 = vsel %vm631_vm2, %v1733_v59, 0  ;;  %v1630_v63 = vsel %vm631_vm2, %v1625_v60, 0 }
 0xac8   : > { %2909 = vmatpush3.bf16.xpose.msra.mxu1 %v1630_v63  ;;  %2921 = vmatpush3.bf16.xpose.msra.mxu0 %v1738_v62 }
 0xac9   : > { %2914 = vmatprep.subr.bf16.mxu1 %v3123_v14  ;;  %2932 = vmatprep.subr.bf16.mxu0 %v3123_v14 }
 0xaca   : > { %v1844_v1 = vpop.permute.xlu0 %1843  ;;  %v1731_v2 = vpop.permute.xlu1 %1730 }
 0xacb   : > { %v1849_v4 = vsel %vm631_vm2, %v1844_v1, 0 }
 0xace   : > { %v1954_v6 = vpop.permute.xlu0 %1953  ;;  %v1842_v7 = vpop.permute.xlu1 %1841 }
 0xacf   : > { %2911 = vmatmul.mubr.msk.bf16.vlgmr.msra.gmra.mxu1 %vm631_vm2, %v1621_v55  ;;  %2923 = vmatmul.mubr.msk.bf16.vlgmr.msra.gmra.mxu0 %vm631_vm2, %v1731_v2  ;;  %v1959_v8 = vsel %vm631_vm2, %v1954_v6, 0 }
 0xad0   : > { %2915 = vmatpush3.bf16.msra.mxu1 %v1688_v5  ;;  %2933 = vmatpush3.bf16.xpose.msra.mxu0 %v1849_v4 }
 0xad1   : > { %2934 = vmatprep.mubr.msk.bf16.mxu0 %vm3124_vm1, %v3123_v14  ;;  %2944 = vmatprep.subr.bf16.mxu0 %v3123_v14 }
 0xad2   : > { %2916 = vmatprep.mubr.msk.bf16.mxu1 %vm3124_vm1, %v3123_v14  ;;  %2926 = vmatprep.subr.bf16.mxu1 %v3123_v14  ;;  %v1952_v9 = vpop.permute.xlu1 %1951 }
 0xad7   : > { %2935 = vmatmul.mubr.msk.bf16.vlgmr.msra.gmra.mxu0 %vm631_vm2, %v1842_v7 }
 0xad8   : > { %2945 = vmatpush3.bf16.xpose.msra.mxu0 %v1959_v8  ;;  %2946 = vmatprep.mubr.msk.bf16.mxu0 %vm3124_vm1, %v3123_v14 }
 0xad9   : > { %2956 = vmatprep.subr.bf16.mxu0 %v3123_v14 }
 0xadf   : > { %2947 = vmatmul.mubr.msk.bf16.vlgmr.msra.gmra.mxu0 %vm631_vm2, %v1952_v9 }
 0xae0   : > { %2964 = vmatprep.mubr.msk.bf16.mxu0 %vm3124_vm1, %v3123_v14 }
 0xb8f   : > { %v1666_v11 = vpop.f32.mrf.mxu1  ;;  %v1774_v12 = vpop.f32.mrf.mxu0 }
 0xb90   : > { %v1667_v13 = vadd.f32 %v1666_v11, %v3314_v40  ;;  %v1775_v16 = vadd.f32 %v1774_v12, %v3314_v40 }
 0xb91   : > { %v2912_v17 = vpop.f32.mrf.mxu1  ;;  %v2924_v18 = vpop.f32.mrf.mxu0 }
 0xb92   : > { %v1780_v19 = vsel %vm678_vm4, %v1775_v16, -inf  ;;  %v1672_v20 = vsel %vm678_vm4, %v1667_v13, -inf }
 0xb93   : > { %1781 = vmax.xlane.f32.xlu1 %v1780_v19  ;;  %v1777_v21 = vpop.f32.mrf.mxu0  ;;  %1673 = vmax.xlane.f32.xlu0 %v1672_v20  ;;  %v1669_v22 = vpop.f32.mrf.mxu1  ;;  %v3042_v20 = vld [vmem:[%s3717_s4 + $0x38] sm:$0xff]  }
 0xb94   : > { %2957 = vmatpush3.bf16.msra.mxu0 %v3042_v20 }
 0xb95   : > { %v2913_v23 = vpop.f32.mrf.mxu1  ;;  %v2925_v25 = vpop.f32.mrf.mxu0  ;;  %2958 = vmatprep.subr.bf16.mxu0 %v3123_v14 }
 0xb97   : > { %v1885_v26 = vpop.f32.mrf.mxu0 }
 0xb98   : > { %v1886_v27 = vadd.f32 %v1885_v26, %v3314_v40 }
 0xb99   : > { %v2936_v28 = vpop.f32.mrf.mxu0 }
 0xb9a   : > { %v1891_v29 = vsel %vm678_vm4, %v1886_v27, -inf }
 0xb9b   : > { %1892 = vmax.xlane.f32.xlu0 %v1891_v29  ;;  %v1888_v30 = vpop.f32.mrf.mxu0 }
 0xb9c   : > { %v3044_v30 = vld [vmem:[%s3717_s4 + $0x28] sm:$0xff]  }
 0xb9d   : > { %v2937_v10 = vpop.f32.mrf.mxu0 }
 0xb9e   : > { %v3045_v10 = vld [vmem:[%s3717_s4 + $0x20] sm:$0xff]  }
 0xb9f   : > { %v1995_v32 = vpop.f32.mrf.mxu0 }
 0xba0   : > { %v1996_v33 = vadd.f32 %v1995_v32, %v3314_v40 }
 0xba1   : > { %v2948_v34 = vpop.f32.mrf.mxu0 }
 0xba2   : > { %v2001_v35 = vsel %vm678_vm4, %v1996_v33, -inf }
 0xba3   : > { %2002 = vmax.xlane.f32.xlu0 %v2001_v35  ;;  %v1998_v31 = vpop.f32.mrf.mxu0 }
 0xba5   : > { %v2949_v36 = vpop.f32.mrf.mxu0 }
 0xc1c   : > { %v1782_v37 = vpop.xlane.xlu1 %1781  ;;  %v1674_v38 = vpop.xlane.xlu0 %1673 }
 0xc1d   : > { %v1783_v39 = vsub.f32 %v1775_v16, %v1782_v37  ;;  %v1675_v41 = vsub.f32 %v1667_v13, %v1674_v38 }
 0xc1f   : > { %v1784_v42 = vmul.f32 1.442695, %v1783_v39  ;;  %v1676_v43 = vmul.f32 1.442695, %v1675_v41 }
 0xc21   : > { %3094 = vpow2.f32 %v1784_v42 }
 0xc22   : > { %3096 = vpow2.f32 %v1676_v43 }
 0xc24   : > { %v1893_v44 = vpop.xlane.xlu0 %1892 }
 0xc25   : > { %v1894_v54 = vsub.f32 %v1886_v27, %v1893_v44 }
 0xc27   : > { %v1895_v55 = vmul.f32 1.442695, %v1894_v54 }
 0xc2c   : > { %v2003_v45 = vpop.xlane.xlu0 %2002 }
 0xc2d   : > { %v2004_v46 = vsub.f32 %v1996_v33, %v2003_v45 }
 0xc2e   : > { %v3095_v47 = vpop.eup %3094 }
 0xc2f   : > { %v3097_v49 = vpop.eup %3096  ;;  %v2005_v40 = vmul.f32 1.442695, %v2004_v46  ;;  %v1786_v50 = vsel %vm678_vm4, %v3095_v47, 0.0  ;;  %v2676_v46 = vld [vmem:[%s3718_s5 + $0x1] ss:$0 sm:$0xff] }
 0xc30   : > { %1787 = vadd.xlane.f32.xlu0 %v1786_v50  ;;  %v1678_v51 = vsel %vm678_vm4, %v3097_v49, 0.0 }
 0xc31   : > { %3098 = vpow2.f32 %v2005_v40  ;;  %1679 = vadd.xlane.f32.xlu1 %v1678_v51 }
 0xc32   : > { %3100 = vpow2.f32 %v1895_v55 }
 0xc3e   : > { %v3099_v52 = vpop.eup %3098 }
 0xc3f   : > { %v2007_v53 = vsel %vm678_vm4, %v3099_v52, 0.0  ;;  %v3101_v56 = vpop.eup %3100 }
 0xc40   : > { %2008 = vadd.xlane.f32.xlu0 %v2007_v53  ;;  %v1897_v57 = vsel %vm678_vm4, %v3101_v56, 0.0 }
 0xc42   : > { %1793 = vrot.lane.b32.xlu1 %v3525_v0, %s3125_s18 }
 0xc56   : > { %1903 = vrot.lane.b32.xlu0 %v3525_v0, %s3738_s22 }
 0xc66   : > { %1898 = vadd.xlane.f32.xlu1 %v1897_v57 }
 0xc77   : > { %2013 = vrot.lane.b32.xlu1 %v3525_v0, %s3740_s0 }
 0xcb9   : > { %v1788_v59 = vpop.xlane.xlu0 %1787 }
 0xcba   : > { %v1680_v58 = vpop.xlane.xlu1 %1679 }
 0xcbb   : > { %3102 = vrcp.f32 %v1680_v58 }
 0xcbc   : > { %3104 = vrcp.f32 %v1788_v59  ;;  %v3048_v59 = vld [vmem:[%s3723_s10 + $0x74] ss:$8 sps:$4 sm:$0xff]  }
 0xcbe   : > { %v1794_v62 = vpop.permute.xlu1 %1793 }
 0xcbf   : > { %v1799_v4 = vsel %vm694_vm3, %v1794_v62, 0  ;;  %v3054_v62 = vld [vmem:[%s3723_s10 + $0x54] ss:$8 sps:$4 sm:$0xff]  }
 0xcc8   : > { %v3103_v60 = vpop.eup %3102 }
 0xcc9   : > { %v1682_v61 = vmul.f32 %v3103_v60, %v3097_v49  ;;  %v3105_v1 = vpop.eup %3104  ;;  %v2009_v2 = vpop.xlane.xlu0 %2008  ;;  %v3051_v60 = vld [vmem:[%s3723_s10 + $0x64] ss:$8 sps:$4 sm:$0xff]  }
 0xcca   : > { %v1790_v0 = vmul.f32 %v3105_v1, %v3095_v47  ;;  %v3057_v1 = vld [vmem:[%s3723_s10 + $0x44] ss:$8 sps:$4 sm:$0xff]  }
 0xccb   : > { %v1683_v63 = vpack.c.bf16 %v1682_v61, %v1682_v61  ;;  %v3049_v61 = vld [vmem:[%s3723_s10 + $0x60] ss:$8 sps:$4 sm:$0xff]  }
 0xccc   : > { %v1791_v6 = vpack.c.bf16 %v1790_v0, %v1790_v0  ;;  %v3059_v0 = vld [vmem:[%s3725_s12 + $0xb8] sm:$0xff]  }
 0xccd   : > { %2917 = vmatmul.mubr.msk.bf16.vlgmr.msra.gmra.mxu1 %vm678_vm4, %v1683_v63  ;;  %v1904_v5 = vpop.permute.xlu0 %1903  ;;  %v3052_v63 = vld [vmem:[%s3723_s10 + $0x50] ss:$8 sps:$4 sm:$0xff]  }
 0xcce   : > { %2927 = vmatpush3.bf16.msra.mxu1 %v1799_v4  ;;  %2928 = vmatprep.mubr.msk.bf16.mxu1 %vm3124_vm1, %v3123_v14  ;;  %v1909_v7 = vsel %vm694_vm3, %v1904_v5, 0  ;;  %v3058_v4 = vld [vmem:[%s3725_s12 + $0xf8] sm:$0xff]   ;;  %v3060_v5 = vld [vmem:[%s3725_s12 + $0xf0] sm:$0xff]  }
 0xccf   : > { %2938 = vmatprep.subr.bf16.mxu1 %v3123_v14 }
 0xcd5   : > { %2929 = vmatmul.mubr.msk.bf16.vlgmr.msra.gmra.mxu1 %vm678_vm4, %v1791_v6  ;;  %v3061_v6 = vld [vmem:[%s3725_s12 + $0xb0] sm:$0xff]  }
 0xcd6   : > { %2939 = vmatpush3.bf16.msra.mxu1 %v1909_v7  ;;  %2940 = vmatprep.mubr.msk.bf16.mxu1 %vm3124_vm1, %v3123_v14  ;;  %v3062_v7 = vld [vmem:[%s3725_s12 + $0xe8] sm:$0xff]  }
 0xcd7   : > { %2950 = vmatprep.subr.bf16.mxu1 %v3123_v14 }
 0xcef   : > { %v1899_v8 = vpop.xlane.xlu1 %1898 }
 0xcf0   : > { %3106 = vrcp.f32 %v1899_v8  ;;  %v3063_v8 = vld [vmem:[%s3725_s12 + $0xa8] sm:$0xff]  }
 0xcf1   : > { %3108 = vrcp.f32 %v2009_v2  ;;  %v3055_v2 = vld [vmem:[%s3723_s10 + $0x40] ss:$8 sps:$4 sm:$0xff]  }
 0xcf3   : > { %v2014_v12 = vpop.permute.xlu1 %2013 }
 0xcf4   : > { %v2019_v17 = vsel %vm694_vm3, %v2014_v12, 0  ;;  %v3066_v12 = vld [vmem:[%s3725_s12 + $0xd8] sm:$0xff]  }
 0xcfd   : > { %v3107_v9 = vpop.eup %3106 }
 0xcfe   : > { %v1901_v11 = vmul.f32 %v3107_v9, %v3101_v56  ;;  %v3109_v16 = vpop.eup %3108  ;;  %v3064_v9 = vld [vmem:[%s3725_s12 + $0xe0] sm:$0xff]  }
 0xcff   : > { %v2011_v18 = vmul.f32 %v3109_v16, %v3099_v52  ;;  %v3068_v16 = vld [vmem:[%s3725_s12 + $0xd0] sm:$0xff]  }
 0xd00   : > { %v1902_v13 = vpack.c.bf16 %v1901_v11, %v1901_v11  ;;  %v3065_v11 = vld [vmem:[%s3725_s12 + $0xa0] sm:$0xff]  }
 0xd01   : > { %v2012_v19 = vpack.c.bf16 %v2011_v18, %v2011_v18 }
 0xd02   : > { %2941 = vmatmul.mubr.msk.bf16.vlgmr.msra.gmra.mxu1 %vm678_vm4, %v1902_v13  ;;  %v3067_v13 = vld [vmem:[%s3725_s12 + $0x98] sm:$0xff]  }
 0xd03   : > { %2951 = vmatpush3.bf16.msra.mxu1 %v2019_v17  ;;  %2952 = vmatprep.mubr.msk.bf16.mxu1 %vm3124_vm1, %v3123_v14  ;;  %v3069_v17 = vld [vmem:[%s3725_s12 + $0x90] sm:$0xff]  }
 0xd04   : > { %2267 = vmatprep.subr.bf16.mxu1 %v3048_v59 }
 0xd0a   : > { %2953 = vmatmul.mubr.msk.bf16.vlgmr.msra.gmra.mxu1 %vm678_vm4, %v2012_v19 }
 0xd0b   : > { %2291 = vmatprep.mubr.bf16.mxu1 %v3122_v3  ;;  %v3043_v3 = vld [vmem:[%s3717_s4 + $0x30] sm:$0xff]  }
 0xd0c   : > { %2959 = vmatpush3.bf16.msra.mxu0 %v3043_v3  ;;  %v3071_v3 = vld [vmem:[%s3725_s12 + $0x88] sm:$0xff]  }
 0xd0d   : > { %2960 = vmatprep.subr.bf16.mxu0 %v3123_v14 }
 0xd10   : > { %2961 = vmatpush3.bf16.msra.mxu0 %v3044_v30  ;;  %v3072_v30 = vld [vmem:[%s3725_s12 + $0xc0] sm:$0xff]  }
 0xd11   : > { %2962 = vmatprep.subr.bf16.mxu0 %v3123_v14 }
 0xd14   : > { %2963 = vmatpush3.bf16.msra.mxu0 %v3045_v10  ;;  %v3073_v10 = vld [vmem:[%s3725_s12 + $0x80] sm:$0xff]  }
 0xd15   : > { %2826 = vmatprep.subr.bf16.mxu0 %v3058_v4 }
 0xd8d   : > { %v1724_v21 = vpop.f32.mrf.mxu1 }
 0xd8f   : > { %v2918_v22 = vpop.f32.mrf.mxu1 }
 0xd90   : > { %v2684_v22 = vld [vmem:[%s3719_s6 + $0x1] ss:$0 sm:$0xff] }
 0xd91   : > { %v1727_v23 = vpop.f32.mrf.mxu1 }
 0xd93   : > { %v2919_v25 = vpop.f32.mrf.mxu1 }
 0xd94   : > { %v2685_v25 = vld [vmem:[%s3720_s7 + $0x1] ss:$0 sm:$0xff] }
 0xd95   : > { %v1835_v26 = vpop.f32.mrf.mxu1 }
 0xd96   : > { %2062 = vrot.lane.b32.xlu1 %v1835_v26, %s3739_s25 }
 0xd97   : > { %v2930_v27 = vpop.f32.mrf.mxu1 }
 0xd99   : > { %v1838_v28 = vpop.f32.mrf.mxu1 }
 0xd9b   : > { %v2931_v29 = vpop.f32.mrf.mxu1 }
 0xd9c   : > { %v3070_v29 = vld [vmem:[%s3725_s12 + $0xc8] sm:$0xff]  }
 0xdc2   : > { %v1945_v32 = vpop.f32.mrf.mxu1 }
 0xdc3   : > { %2066 = vrot.lane.b32.xlu0 %v1945_v32, %s3127_s20  ;;  %v2694_v32 = vld [vmem:[%s3724_s11 + $0x2] sm:$0x3] }
 0xdc4   : > { %v2942_v33 = vpop.f32.mrf.mxu1 }
 0xdc5   : > { %v2209_v33 = vrot.slane %v2694_v32, %v3266_v15 }
 0xdc6   : > { %v1948_v34 = vpop.f32.mrf.mxu1 }
 0xdc7   : > { %v2213_v34 = vrot.slane %v2694_v32, %v3283_v24 }
 0xdc8   : > { %v2943_v35 = vpop.f32.mrf.mxu1 }
 0xdca   : > { %v2055_v31 = vpop.f32.mrf.mxu1 }
 0xdcb   : > { %2070 = vrot.lane.b32.xlu1 %v2055_v31, %s3128_s21 }
 0xdcc   : > { %v2954_v36 = vpop.f32.mrf.mxu1 }
 0xdce   : > { %v2058_v37 = vpop.f32.mrf.mxu1 }
 0xdd0   : > { %v2955_v38 = vpop.f32.mrf.mxu1 }
 0xe08   : > { %v2063_v39 = vpop.permute.xlu1 %2062 }
 0xe09   : > { %v2073_v14 = vsel %vm631_vm2, %v1724_v21, %v2063_v39 }
 0xe35   : > { %v2067_v41 = vpop.permute.xlu0 %2066 }
 0xe36   : > { %v2074_v42 = vsel %vm1082_vm5, %v2073_v14, %v2067_v41 }
 0xe3d   : > { %v2071_v43 = vpop.permute.xlu1 %2070 }
 0xe3e   : > { %v2075_v44 = vsel %vm1084_vm6, %v2074_v42, %v2071_v43 }
 0xe3f   : > { %v2076_v45 = vpack.c.bf16 %v2075_v44, %v2075_v44 }
 0xe41   : > { %2965 = vmatmul.mubr.msk.bf16.vlgmr.msra.gmra.mxu0 %vm581_vm0, %v2076_v45  ;;  %v2737_v45 = vld [vmem:[%s3726_s13 + $0x1] ss:$0 sm:$0xff] }
 0xe42   : > { %2827 = vmatpush3.bf16.msra.mxu0 %v3059_v0  ;;  %v2759_v0 = vld [vmem:[#allocation2] ss:$0 sm:$0xff] }
 0xe43   : > { %2828 = vmatprep.subr.bf16.mxu0 %v3060_v5 }
 0xe46   : > { %2829 = vmatpush3.bf16.msra.mxu0 %v3061_v6 }
 0xe47   : > { %2830 = vmatprep.subr.bf16.mxu0 %v3062_v7 }
 0xe4a   : > { %2831 = vmatpush3.bf16.msra.mxu0 %v3063_v8 }
 0xe4b   : > { %2832 = vmatprep.subr.bf16.mxu0 %v3064_v9 }
 0xe4e   : > { %2833 = vmatpush3.bf16.msra.mxu0 %v3065_v11 }
 0xe4f   : > { %2834 = vmatprep.subr.bf16.mxu0 %v3066_v12 }
 0xe52   : > { %2835 = vmatpush3.bf16.msra.mxu0 %v3067_v13 }
 0xe53   : > { %2836 = vmatprep.subr.bf16.mxu0 %v3068_v16 }
 0xe56   : > { %2837 = vmatpush3.bf16.msra.mxu0 %v3069_v17 }
 0xe57   : > { %2838 = vmatprep.subr.bf16.mxu0 %v3070_v29 }
 0xe5a   : > { %2839 = vmatpush3.bf16.msra.mxu0 %v3071_v3 }
 0xe5b   : > { %2840 = vmatprep.subr.bf16.mxu0 %v3072_v30 }
 0xe5e   : > { %2841 = vmatpush3.bf16.msra.mxu0 %v3073_v10 }
 0xf01   : > { %v2155_v47 = vpop.f32.mrf.mxu0 }
 0xf02   : > { %v2156_v49 = vadd.f32 %v2676_v46, %v2155_v47 }
 0xf03   : > { %v2966_v40 = vpop.f32.mrf.mxu0 }
 0xf04   : > { %v2161_v50 = vadd.f32 %v2156_v49, %v3502_v48  ;;  %v3046_v48 = vld [vmem:[%s3723_s10 + $0x70] ss:$8 sps:$4 sm:$0xff]  }
 0xf05   : > { %v2158_v51 = vpop.f32.mrf.mxu0  ;;  %2268 = vmatpush1.bf16.msra.mxu1 %v3046_v48  ;;  %v2756_v48 = vld [vmem:[%s3721_s8 + $0x1] ss:$0 sm:$0xff] }
 0xf06   : > { %v2166_v52 = vsel %vm581_vm0, %v2161_v50, 0.0  ;;  %2269 = vmatprep.subr.bf16.mxu1 %v3051_v60 }
 0xf07   : > { %2167 = vadd.xlane.f32.xlu0 %v2166_v52  ;;  %v2967_v53 = vpop.f32.mrf.mxu0 }
 0xf09   : > { %2270 = vmatpush1.bf16.msra.mxu1 %v3049_v61  ;;  %v2757_v61 = vld [vmem:[%s3722_s9 + $0x1] ss:$0 sm:$0xff] }
 0xf0a   : > { %2271 = vmatprep.subr.bf16.mxu1 %v3054_v62 }
 0xf0d   : > { %2272 = vmatpush1.bf16.msra.mxu1 %v3052_v63  ;;  %v2758_v63 = vld [vmem:[%s3727_s14] ss:$0 sm:$0xff] }
 0xf0e   : > { %2273 = vmatprep.subr.bf16.mxu1 %v3057_v1 }
 0xf11   : > { %2274 = vmatpush1.bf16.msra.mxu1 %v3055_v2 }
 0xf90   : > { %v2168_v54 = vpop.xlane.xlu0 %2167 }
 0xf91   : > { %v2169_v55 = vmul.f32 0.015625, %v2168_v54 }
 0xf93   : > { %v2170_v56 = vsub.f32 %v2161_v50, %v2169_v55 }
 0xf95   : > { %v2171_v57 = vmul.f32 %v2170_v56, %v2170_v56 }
 0xf97   : > { %v2172_v58 = vsel %vm581_vm0, %v2171_v57, 0.0 }
 0xf98   : > { %2173 = vadd.xlane.f32.xlu1 %v2172_v58 }
0x1021   : > { %v2174_v18 = vpop.xlane.xlu1 %2173 }
0x1022   : > { %v2175_v19 = vmul.f32 0.015625, %v2174_v18 }
0x1024   : > { %v2176_v20 = vadd.f32 1e-05, %v2175_v19 }
0x1026   : > { %3110 = vrsqrt.f32 %v2176_v20 }
0x1033   : > { %v3111_v21 = vpop.eup %3110 }
0x1034   : > { %v2178_v23 = vmul.f32 %v3111_v21, %v2170_v56 }
0x1036   : > { %v2185_v26 = vmul.f32 %v2684_v22, %v2178_v23 }
0x1038   : > { %v2192_v27 = vadd.f32 %v2685_v25, %v2185_v26 }
0x103a   : > { %v2193_v28 = vpack.c.bf16 %v2192_v27, %v2192_v27 }
0x103c   : > { %2703 = vmatmul.mubr.msk.bf16.vlgmr.msra.gmra.mxu1 %vm581_vm0, %v2193_v28 }
0x10fc   : > { %v2293_v35 = vpop.f32.mrf.mxu1 }
0x10fd   : > { %v2294_v31 = vadd.f32 %v2293_v35, %v2209_v33 }
0x10fe   : > { %v2295_v36 = vpop.f32.mrf.mxu1 }
0x10ff   : > { %v2296_v37 = vadd.f32 %v2295_v36, %v2213_v34  ;;  %v2300_v38 = vmax.f32 %v2294_v31, 0.0 }
0x1100   : > { %v2297_v39 = vpop.f32.mrf.mxu1 }
0x1101   : > { %v2301_v41 = vmax.f32 %v2296_v37, 0.0  ;;  %v2302_v43 = vpack.c.bf16 %v2300_v38, %v2300_v38 }
0x1102   : > { %v2298_v14 = vpop.f32.mrf.mxu1 }
0x1103   : > { %v2303_v42 = vpack.c.bf16 %v2301_v41, %v2301_v41 }
0x1105   : > { %2473 = vmatprep.mubr.bf16.mxu0 %v2303_v42 }
0x1106   : > { %2474 = vmatmul.mubr.bf16.vlgmr.msra.gmra.mxu0 %v2302_v43 }
0x11c6   : > { %v2842_v44 = vpop.f32.mrf.mxu0 }
0x11c8   : > { %v2843_v15 = vpop.f32.mrf.mxu0 }
0x11c9   : > { %v2844_v46 = vadd.f32 %v2843_v15, %v2842_v44 }
0x11ca   : > { %v2845_v24 = vpop.f32.mrf.mxu0 }
0x11cb   : > { %v2476_v47 = vadd.f32 %v2844_v46, %v2737_v45 }
0x11cc   : > { %v2846_v49 = vpop.f32.mrf.mxu0 }
0x11cd   : > { %v2481_v40 = vadd.f32 %v2476_v47, %v2192_v27 }
0x11cf   : > { %v2486_v50 = vsel %vm581_vm0, %v2481_v40, 0.0 }
0x11d0   : > { %2487 = vadd.xlane.f32.xlu0 %v2486_v50 }
0x1259   : > { %v2488_v51 = vpop.xlane.xlu0 %2487 }
0x125a   : > { %v2489_v52 = vmul.f32 0.015625, %v2488_v51 }
0x125c   : > { %v2490_v53 = vsub.f32 %v2481_v40, %v2489_v52 }
0x125e   : > { %v2491_v54 = vmul.f32 %v2490_v53, %v2490_v53 }
0x1260   : > { %v2492_v55 = vsel %vm581_vm0, %v2491_v54, 0.0 }
0x1261   : > { %2493 = vadd.xlane.f32.xlu0 %v2492_v55 }
0x12ea   : > { %v2494_v56 = vpop.xlane.xlu0 %2493 }
0x12eb   : > { %v2495_v57 = vmul.f32 0.015625, %v2494_v56 }
0x12ed   : > { %v2496_v58 = vadd.f32 1e-05, %v2495_v57 }
0x12ef   : > { %3112 = vrsqrt.f32 %v2496_v58 }
0x12fc   : > { %v3113_v59 = vpop.eup %3112 }
0x12fd   : > { %v2498_v60 = vmul.f32 %v3113_v59, %v2490_v53 }
0x12ff   : > { %v2505_v62 = vmul.f32 %v2756_v48, %v2498_v60 }
0x1301   : > { %v2512_v1 = vadd.f32 %v2757_v61, %v2505_v62 }
0x1303   : > { %v2520_v2 = vmul.f32 %v2758_v63, %v2512_v1 }
0x1305   : > { %v2522_v4 = vsel %vm2521_vm7, %v2520_v2, 0.0 }
0x1306   : > { %2523 = vadd.xlane.f32.xlu1 %v2522_v4 }
0x138f   : > { %v2524_v5 = vpop.xlane.xlu1 %2523 }
0x1390   : > { %v2532_v6 = vadd.f32 %v2759_v0, %v2524_v5 }
0x1392   : > { %2534 = vst.msk [vmem:[%s516_s27 - $0x7] sm:$0x80] %vm2533_vm8, %v2532_v6 }
0x1393 PF: > { %s28_s23 = sadd.s32 1, %s3120_s23  }
0x1394   : > { %p25_p4 = scmp.ge.s32.totalorder %s28_s23, 4  }
0x1396   :  { %27 = sbr.rel (!%p25_p4) target bundleno = 3 (0x3), region = 126 }

</bundles_post_ra>
